<compile_context>
chip_gen: v7x
topology: tpu7x:2x2x1
jax: 0.10.0
libtpu: 0.0.40
codegen_flags: <defaults>
</compile_context>

<pallas_src>
import jax
import jax.numpy as jnp
import numpy as np
from jax import lax
from jax.experimental import pallas as pl
from jax.experimental.pallas import tpu as pltpu


def _make_pool_kernel(reduce, n_emb_p, n_rows, n_frag, tile_n, tile_out):
    """Build the kernel: accumulate one fragment tile into the lane-dense output tile."""

    def kernel(start_ref, cnt_ref, idx_ref, emb_ref, out_ref):
        o = pl.program_id(0)   # output (cell x region row) tile
        f = pl.program_id(1)   # step over this output tile's fragment tiles

        @pl.when(f == 0)
        def _init():
            out_ref[...] = jnp.zeros_like(out_ref)

        @pl.when(f < cnt_ref[o])
        def _accumulate():
            ft = start_ref[o] + f                       # true global fragment-tile index
            emb = emb_ref[...]                          # (tile_n, n_emb_p)

            # Ragged tail of the *unpadded* embedding: rows >= n_frag of the partial edge
            # DMA hold garbage.  Select (not multiply) them to zero so NaNs cannot leak.
            local = lax.broadcasted_iota(jnp.int32, (tile_n, 1), 0)
            valid = (ft * tile_n + local) < n_frag
            emb = jnp.where(valid, emb, 0)

            if reduce == "mean":
                # Counts ride in the same MXU matmul: append an 8-wide block whose first
                # column is all ones (padded fragments have an all-zero one-hot row, so
                # they never count).
                ones = (lax.broadcasted_iota(jnp.int32, (tile_n, n_rows - n_emb_p), 1) == 0
                        ).astype(emb.dtype)
                emb = jnp.concatenate([emb, ones], axis=1)          # (tile_n, n_rows)

            # One-hot scatter matrix, fragments lane-dense (cheap VPU compare):
            #   one_hot[r, j] = (idx[j] == o*tile_out + r)
            shifted = idx_ref[...] - o * tile_out                   # (1, tile_n)
            rows = lax.broadcasted_iota(jnp.int32, (tile_out, tile_n), 0)
            one_hot = (rows == shifted).astype(emb.dtype)           # (tile_out, tile_n)

            # Scatter-add as a canonical MXU matmul ...
            part = jnp.dot(one_hot, emb,
                           preferred_element_type=jnp.float32)      # (tile_out, n_rows)

            # ... then re-orient the small partial result with a tiny identity matmul in
            # the rhs-transposed ('mk,nk->mn') form so the resident accumulator stays
            # lane-dense (tile_out in the 128-lane axis -> unmasked vld/vst every step).
            eye = (lax.broadcasted_iota(jnp.int32, (n_rows, n_rows), 0)
                   == lax.broadcasted_iota(jnp.int32, (n_rows, n_rows), 1)
                   ).astype(jnp.float32)
            part_t = lax.dot_general(eye, part, (((1,), (1,)), ((), ())),
                                     preferred_element_type=jnp.float32)  # (n_rows, tile_out)
            out_ref[...] += part_t

        if reduce == "mean":
            @pl.when(f == pl.num_programs(1) - 1)
            def _finalize():
                cnt = jnp.maximum(out_ref[n_emb_p:n_emb_p + 1, :], 1.0)   # (1, tile_out)
                out_ref[0:n_emb_p, :] = out_ref[0:n_emb_p, :] / cnt

    return kernel


def embedding_gene_pooler_forward(embedding, fragment_cellxregion_ix, cell_n, region_n,
                                  *, reduce="sum", tile_n=2048, tile_out=None):
    """Pallas forward pass of EmbeddingGenePooler.

    embedding:               (n_fragments, n_emb) float array
    fragment_cellxregion_ix: (n_fragments,) SORTED int array, values in [0, cell_n*region_n)
                             (sortedness is the segment_*_coo contract of the torch module)
    returns:                 (cell_n, region_n, n_emb) in embedding.dtype
    """
    if reduce not in ("sum", "mean"):
        raise ValueError(reduce)

    n_frag, n_emb = embedding.shape
    n_out = cell_n * region_n

    # ---- tile sizes ---------------------------------------------------------------
    if tile_out is None:
        # 256 fills the v6e/v7x MXU N-columns; tiny problems fall back to one 128 tile.
        tile_out = 256 if n_out > 128 else 128
    tile_n = max(128, min(tile_n, pl.cdiv(n_frag, 128) * 128))

    n_out_tiles = pl.cdiv(n_out, tile_out)
    if n_out_tiles > 1 and n_out_tiles % 2:
        n_out_tiles += 1                       # even #tiles -> both v7x TensorCores busy
    n_out_pad = n_out_tiles * tile_out

    n_frag_tiles = pl.cdiv(n_frag, tile_n)
    n_frag_pad = n_frag_tiles * tile_n

    # Rarely needed: keep the embedding-channel axis 8-aligned for clean tiling.
    n_emb_p = pl.cdiv(n_emb, 8) * 8
    emb_in = embedding
    if n_emb_p != n_emb:
        emb_in = jnp.pad(embedding, ((0, 0), (0, n_emb_p - n_emb)))

    n_rows = n_emb_p + (8 if reduce == "mean" else 0)

    # ---- host-side schedule: contiguous fragment-tile range per output tile --------
    idx_host = np.asarray(fragment_cellxregion_ix).astype(np.int64)
    boundaries = np.arange(n_out_tiles + 1, dtype=np.int64) * tile_out
    pos = np.searchsorted(idx_host, boundaries, side="left")
    lo, hi = pos[:-1], pos[1:]
    start_u = lo // tile_n
    end_tile = -(-hi // tile_n)                                     # ceil
    tile_count = np.where(hi > lo, end_tile - start_u, 0).astype(np.int32)
    tile_start = np.minimum(start_u, n_frag_tiles - 1).astype(np.int32)
    f_max = max(int(tile_count.max()), 1)

    # Fragment indices: pad (cheap, 1-D) with a sentinel (= n_out_pad) that matches no
    # output row.  The embedding itself is never padded/copied.
    idx_pad = np.full((n_frag_pad,), n_out_pad, dtype=np.int32)
    idx_pad[:n_frag] = idx_host
    idx2d = jnp.asarray(idx_pad).reshape(1, n_frag_pad)

    tile_start = jnp.asarray(tile_start, dtype=jnp.int32)
    tile_count = jnp.asarray(tile_count, dtype=jnp.int32)

    def frag_tile(o, f, start_ref, cnt_ref):
        # Dead steps (f >= count) clamp to the previous block index so the DMA is skipped.
        last = start_ref[o] + jnp.maximum(cnt_ref[o] - 1, 0)
        return jnp.minimum(start_ref[o] + f, last)

    grid_spec = pltpu.PrefetchScalarGridSpec(
        num_scalar_prefetch=2,
        grid=(n_out_tiles, f_max),
        in_specs=[
            pl.BlockSpec((1, tile_n), lambda o, f, s, c: (0, frag_tile(o, f, s, c))),
            pl.BlockSpec((tile_n, n_emb_p), lambda o, f, s, c: (frag_tile(o, f, s, c), 0)),
        ],
        out_specs=pl.BlockSpec((n_rows, tile_out), lambda o, f, s, c: (0, o)),
    )

    kernel = _make_pool_kernel(reduce, n_emb_p, n_rows, n_frag, tile_n, tile_out)

    pooled = pl.pallas_call(
        kernel,
        out_shape=jax.ShapeDtypeStruct((n_rows, n_out_pad), jnp.float32),
        grid_spec=grid_spec,
        compiler_params=pltpu.CompilerParams(
            dimension_semantics=("parallel", "arbitrary"),
        ),
    )(tile_start, tile_count, idx2d, emb_in)

    # (n_emb, n_out) lane-dense kernel output -> (cell_n, region_n, n_emb)
    out = pooled[:n_emb, :n_out].T.reshape(cell_n, region_n, n_emb)
    return out.astype(embedding.dtype)


def _reference_forward(embedding, fragment_cellxregion_ix, cell_n, region_n, reduce="sum"):
    """Pure-JAX reference (matches torch_scatter.segment_*_coo semantics)."""
    n_out = cell_n * region_n
    summed = jax.ops.segment_sum(embedding.astype(jnp.float32),
                                 fragment_cellxregion_ix, num_segments=n_out)
    if reduce == "mean":
        counts = jax.ops.segment_sum(jnp.ones((embedding.shape[0],), jnp.float32),
                                     fragment_cellxregion_ix, num_segments=n_out)
        summed = summed / jnp.maximum(counts, 1.0)[:, None]
    return summed.reshape(cell_n, region_n, embedding.shape[-1])


if __name__ == "__main__":
    key = jax.random.PRNGKey(0)
    k_emb, k_idx, k_emb2, k_idx2 = jax.random.split(key, 4)

    # --- small shapes consistent with the module's forward ---
    cell_n, region_n, n_emb, n_fragments = 16, 8, 32, 1000
    embedding = jax.random.normal(k_emb, (n_fragments, n_emb), dtype=jnp.float32)
    # segment_*_coo assumes sorted indices
    fragment_cellxregion_ix = jnp.sort(
        jax.random.randint(k_idx, (n_fragments,), 0, cell_n * region_n, dtype=jnp.int32))

    for red in ("sum", "mean"):
        out = jax.block_until_ready(
            embedding_gene_pooler_forward(embedding, fragment_cellxregion_ix,
                                          cell_n, region_n, reduce=red))
        ref = _reference_forward(embedding, fragment_cellxregion_ix, cell_n, region_n, red)
        assert out.shape == (cell_n, region_n, n_emb)
        assert jnp.allclose(out, ref, rtol=1e-5, atol=1e-5), f"{red} mismatch (small)"

    # --- second config: multiple output tiles, dead steps, ragged fragment tail ---
    cell_n2, region_n2, n_emb2, n_fragments2 = 50, 10, 32, 3000
    embedding2 = jax.random.normal(k_emb2, (n_fragments2, n_emb2), dtype=jnp.float32)
    fragment_ix2 = jnp.sort(
        jax.random.randint(k_idx2, (n_fragments2,), 0, cell_n2 * region_n2, dtype=jnp.int32))

    for red in ("sum", "mean"):
        out = jax.block_until_ready(
            embedding_gene_pooler_forward(embedding2, fragment_ix2,
                                          cell_n2, region_n2, reduce=red))
        ref = _reference_forward(embedding2, fragment_ix2, cell_n2, region_n2, red)
        assert out.shape == (cell_n2, region_n2, n_emb2)
        assert jnp.allclose(out, ref, rtol=1e-5, atol=1e-5), f"{red} mismatch (multi-tile)"

    print("KERNEL_OK")
</pallas_src>

<mosaic_0001>
module attributes {stable_mosaic.version = 11 : i64} {
  func.func @kernel(%arg0: i32, %arg1: i32, %arg2: memref<1xi32, #tpu.memory_space<smem>>, %arg3: memref<1xi32, #tpu.memory_space<smem>>, %arg4: memref<1x1024xi32, #tpu.memory_space<vmem>>, %arg5: memref<1024x32xf32, #tpu.memory_space<vmem>>, %arg6: memref<32x128xf32, #tpu.memory_space<vmem>>) attributes {dimension_semantics = [#tpu.dimension_semantics<parallel>, #tpu.dimension_semantics<arbitrary>], iteration_bounds = array<i64: 1, 1>, scalar_prefetch = 2 : i64, scratch_operands = 0 : i64, tpu.core_type = #tpu.core_type<tc>, window_params = [{transform_indices = @transform_0, window_bounds = array<i64: 1, 1024>}, {transform_indices = @transform_1, window_bounds = array<i64: 1024, 32>}, {transform_indices = @transform_2, window_bounds = array<i64: 32, 128>}]} {
    %c0_i32 = arith.constant 0 : i32
    %0 = arith.cmpi eq, %arg1, %c0_i32 : i32
    %1 = arith.extui %0 : i1 to i32
    %c0_i32_0 = arith.constant 0 : i32
    %2 = arith.cmpi ne, %1, %c0_i32_0 : i32
    scf.if %2 {
      %cst = arith.constant 0.000000e+00 : f32
      %8 = vector.broadcast %cst : f32 to vector<32x128xf32>
      %c0 = arith.constant 0 : index
      %c0_2 = arith.constant 0 : index
      %9 = vector.load %arg6[%c0, %c0_2] : memref<32x128xf32, #tpu.memory_space<vmem>>, vector<32x128xf32>
      tpu.vector_store %arg6[%c0, %c0_2], %8 {strides = array<i32>} : memref<32x128xf32, #tpu.memory_space<vmem>>, vector<32x128xf32>,
    } else {
    }
    %3 = arith.index_cast %arg0 : i32 to index
    %4 = memref.load %arg3[%3] : memref<1xi32, #tpu.memory_space<smem>>
    %5 = arith.cmpi slt, %arg1, %4 : i32
    %6 = arith.extui %5 : i1 to i32
    %c0_i32_1 = arith.constant 0 : i32
    %7 = arith.cmpi ne, %6, %c0_i32_1 : i32
    scf.if %7 {
      %8 = arith.index_cast %arg0 : i32 to index
      %9 = memref.load %arg2[%8] : memref<1xi32, #tpu.memory_space<smem>>
      %10 = arith.addi %9, %arg1 : i32
      %c0 = arith.constant 0 : index
      %c0_2 = arith.constant 0 : index
      %11 = vector.load %arg5[%c0, %c0_2] : memref<1024x32xf32, #tpu.memory_space<vmem>>, vector<1024x32xf32>
      %12 = tpu.iota {dimensions = array<i32: 0>} : vector<1024x1xi32>
      %c1024_i32 = arith.constant 1024 : i32
      %13 = arith.muli %10, %c1024_i32 : i32
      %14 = vector.broadcast %13 : i32 to vector<1024x1xi32>
      %15 = arith.addi %14, %12 : vector<1024x1xi32>
      %c1000_i32 = arith.constant 1000 : i32
      %16 = vector.broadcast %c1000_i32 : i32 to vector<1024x1xi32>
      %17 = arith.cmpi slt, %15, %16 : vector<1024x1xi32>
      %c0_i32_3 = arith.constant 0 : i32
      %18 = arith.sitofp %c0_i32_3 : i32 to f32
      %19 = vector.shape_cast %17 : vector<1024x1xi1> to vector<1024x1xi1>
      %20 = vector.broadcast %19 : vector<1024x1xi1> to vector<1024x32xi1>
      %21 = vector.broadcast %18 : f32 to vector<1024x32xf32>
      %22 = arith.select %20, %11, %21 : vector<1024x32xi1>, vector<1024x32xf32>
      %c0_4 = arith.constant 0 : index
      %c0_5 = arith.constant 0 : index
      %23 = vector.load %arg4[%c0_4, %c0_5] : memref<1x1024xi32, #tpu.memory_space<vmem>>, vector<1x1024xi32>
      %c128_i32 = arith.constant 128 : i32
      %24 = arith.muli %arg0, %c128_i32 : i32
      %25 = vector.broadcast %24 : i32 to vector<1x1024xi32>
      %26 = arith.subi %23, %25 : vector<1x1024xi32>
      %27 = tpu.iota {dimensions = array<i32: 0>} : vector<128x1024xi32>
      %28 = vector.broadcast %26 : vector<1x1024xi32> to vector<128x1024xi32>
      %29 = arith.cmpi eq, %27, %28 : vector<128x1024xi32>
      %30 = arith.extui %29 : vector<128x1024xi1> to vector<128x1024xi32>
      %31 = arith.sitofp %30 : vector<128x1024xi32> to vector<128x1024xf32>
      %cst = arith.constant dense<0.000000e+00> : vector<128x32xf32>
      %32 = tpu.matmul %31, %22, %cst {dimension_numbers = #tpu.dot_dimension_numbers<[1], [0], [0], [1], [0, 0, 1, 1], [], []>} : vector<128x1024xf32>, vector<1024x32xf32>, vector<128x32xf32> -> vector<128x32xf32>
      %33 = tpu.iota {dimensions = array<i32: 0>} : vector<32x32xi32>
      %34 = tpu.iota {dimensions = array<i32: 1>} : vector<32x32xi32>
      %35 = arith.cmpi eq, %33, %34 : vector<32x32xi32>
      %36 = arith.extui %35 : vector<32x32xi1> to vector<32x32xi32>
      %37 = arith.sitofp %36 : vector<32x32xi32> to vector<32x32xf32>
      %cst_6 = arith.constant dense<0.000000e+00> : vector<32x128xf32>
      %38 = tpu.matmul %37, %32, %cst_6 {dimension_numbers = #tpu.dot_dimension_numbers<[1], [1], [0], [0], [0, 0, 1, 0], [], []>} : vector<32x32xf32>, vector<128x32xf32>, vector<32x128xf32> -> vector<32x128xf32>
      %c0_7 = arith.constant 0 : index
      %c0_8 = arith.constant 0 : index
      %39 = vector.load %arg6[%c0_7, %c0_8] : memref<32x128xf32, #tpu.memory_space<vmem>>, vector<32x128xf32>
      %40 = arith.addf %39, %38 : vector<32x128xf32>
      %c0_9 = arith.constant 0 : index
      %c0_10 = arith.constant 0 : index
      %41 = vector.load %arg6[%c0_9, %c0_10] : memref<32x128xf32, #tpu.memory_space<vmem>>, vector<32x128xf32>
      tpu.vector_store %arg6[%c0_9, %c0_10], %40 {strides = array<i32>} : memref<32x128xf32, #tpu.memory_space<vmem>>, vector<32x128xf32>,
    } else {
    }
    return
  }
  func.func @transform_0(%arg0: i32, %arg1: i32, %arg2: memref<1xi32, #tpu.memory_space<smem>>, %arg3: memref<1xi32, #tpu.memory_space<smem>>) -> (i32, i32) {
    %0 = arith.index_cast %arg0 : i32 to index
    %1 = memref.load %arg2[%0] : memref<1xi32, #tpu.memory_space<smem>>
    %2 = arith.index_cast %arg0 : i32 to index
    %3 = memref.load %arg3[%2] : memref<1xi32, #tpu.memory_space<smem>>
    %c1_i32 = arith.constant 1 : i32
    %4 = arith.subi %3, %c1_i32 : i32
    %c0_i32 = arith.constant 0 : i32
    %5 = arith.maxsi %4, %c0_i32 : i32
    %6 = arith.addi %1, %5 : i32
    %7 = arith.index_cast %arg0 : i32 to index
    %8 = memref.load %arg2[%7] : memref<1xi32, #tpu.memory_space<smem>>
    %9 = arith.addi %8, %arg1 : i32
    %10 = arith.minsi %9, %6 : i32
    %c0_i32_0 = arith.constant 0 : i32
    %c0_i32_1 = arith.constant 0 : i32
    return %c0_i32_0, %10 : i32, i32
  }
  func.func @transform_1(%arg0: i32, %arg1: i32, %arg2: memref<1xi32, #tpu.memory_space<smem>>, %arg3: memref<1xi32, #tpu.memory_space<smem>>) -> (i32, i32) {
    %0 = arith.index_cast %arg0 : i32 to index
    %1 = memref.load %arg2[%0] : memref<1xi32, #tpu.memory_space<smem>>
    %2 = arith.index_cast %arg0 : i32 to index
    %3 = memref.load %arg3[%2] : memref<1xi32, #tpu.memory_space<smem>>
    %c1_i32 = arith.constant 1 : i32
    %4 = arith.subi %3, %c1_i32 : i32
    %c0_i32 = arith.constant 0 : i32
    %5 = arith.maxsi %4, %c0_i32 : i32
    %6 = arith.addi %1, %5 : i32
    %7 = arith.index_cast %arg0 : i32 to index
    %8 = memref.load %arg2[%7] : memref<1xi32, #tpu.memory_space<smem>>
    %9 = arith.addi %8, %arg1 : i32
    %10 = arith.minsi %9, %6 : i32
    %c0_i32_0 = arith.constant 0 : i32
    %c0_i32_1 = arith.constant 0 : i32
    return %10, %c0_i32_0 : i32, i32
  }
  func.func @transform_2(%arg0: i32, %arg1: i32, %arg2: memref<1xi32, #tpu.memory_space<smem>>, %arg3: memref<1xi32, #tpu.memory_space<smem>>) -> (i32, i32) {
    %c0_i32 = arith.constant 0 : i32
    %c0_i32_0 = arith.constant 0 : i32
    return %c0_i32, %arg0 : i32, i32
  }
}

</mosaic_0001>

<bundles_post_ra>
// kernel: tpu_custom_call.1
= control target key start
LH: loop header
LB: loop body
LE: loop exit
PB: predicated region body
PF: predicated region fallthrough
CT: control target
= control target key end

     0   :  { %s4494_s0 = inlined_call_operand.<no memory space> [shape: s32[1], index: 0, kind: input, shape index: {}]   ;;  %s4495_s1 = inlined_call_operand.<no memory space> [shape: s32[1], index: 1, kind: input, shape index: {}]   ;;  %s4496_s2 = inlined_call_operand.vmem [shape: s32[1,1024], index: 2, kind: input, shape index: {}]   ;;  %s4497_s3 = inlined_call_operand.vmem [shape: f32[1000,32], index: 3, kind: input, shape index: {}]   ;;  %s4498_s4 = inlined_call_operand.hbm [shape: f32[32,128], index: 4, kind: output, shape index: {}]  }
   0x1   :  { %9 = sst [smem:[#allocation3]] %s4494_s0 }
   0x2   :  { %11 = vsyncpa [#allocation6], 0  ;;  %s96_s17 = sld [smem:[#allocation3]]  ;;  %s2258_s20 = sadd.s32 4294967295, %s4495_s1  ;;  %v3338_v0 = vmov 0.0  }
   0x3   :  { %p99_p0 = scmp.gt.s32.totalorder %s2258_s20, 0  ;;  %151 = vst [vmem:[#allocation5] sm:$0xff] %v3338_v0  ;;  %152 = vst [vmem:[#allocation5 + $0x8] sm:$0xff] %v3338_v0  ;;  %p2264_p4 = scmp.le.s32.totalorder %s4495_s1, 0 }
   0x4   :  { %153 = vst [vmem:[#allocation5 + $0x10] sm:$0xff] %v3338_v0  ;;  %154 = vst [vmem:[#allocation5 + $0x18] sm:$0xff] %v3338_v0  ;;  %s3389_s6 = sld [smem:[#allocation3]] (!%p2264_p4)  ;;  %v290_v3 = vlaneseq (!%p2264_p4) }
   0x5   :  { %s4502_s20 = smov (!%p99_p0, %s2258_s20), 0 }
   0x6   :  { %v3402_v8 = vshrl.u32 (!%p2264_p4), %v290_v3, 7 }
   0x8   :  { %s101_s21 = sadd.s32 %s4502_s20, %s96_s17  ;;  %v307_v17 = vadd.s32 (!%p2264_p4), 128, %v3402_v8  ;;  %v308_v18 = vadd.s32 (!%p2264_p4), 136, %v3402_v8  ;;  %v339_v19 = vadd.s32 (!%p2264_p4), 384, %v3402_v8  ;;  %v340_v20 = vadd.s32 (!%p2264_p4), 392, %v3402_v8 }
   0x9   :  { %p103_p1 = scmp.lt.s32.totalorder %s96_s17, %s101_s21  ;;  %v3431_v23 = vadd.s32 (!%p2264_p4), 8, %v3402_v8  ;;  %v323_v24 = vadd.s32 (!%p2264_p4), 256, %v3402_v8  ;;  %v324_v25 = vadd.s32 (!%p2264_p4), 264, %v3402_v8  ;;  %v309_v26 = vadd.s32 (!%p2264_p4), 144, %v3402_v8 }
   0xa   :  { %s2265_s1 = sshll.u32 (!%p2264_p4), %s3389_s6, 10  ;;  %v310_v27 = vadd.s32 (!%p2264_p4), 152, %v3402_v8  ;;  %v341_v29 = vadd.s32 (!%p2264_p4), 400, %v3402_v8  ;;  %v342_v30 = vadd.s32 (!%p2264_p4), 408, %v3402_v8  ;;  %v3447_v33 = vadd.s32 (!%p2264_p4), 16, %v3402_v8 }
   0xb   :  { %s4504_s17 = smov (!%p103_p1, %s96_s17), %s101_s21  ;;  %159 = sbr.rel (%p2264_p4) target bundleno = 650 (0x28a), region = 17 }
   0xc   :  { %s2259_s22 = sshll.u32 %s4504_s17, 3  ;;  %s2261_s23 = sshll.u32 %s4504_s17, 7  ;;  %v3442_v31 = vstv (!%p2264_p4), %s2265_s1  ;;  %v3450_v34 = vadd.s32 (!%p2264_p4), 24, %v3402_v8  ;;  %v325_v54 = vadd.s32 (!%p2264_p4), 272, %v3402_v8  ;;  %v326_v57 = vadd.s32 (!%p2264_p4), 280, %v3402_v8 }
   0xd   :  { %p106_p2 = scmp.lt.s32.totalorder %s2259_s22, 7  ;;  %p131_p3 = scmp.lt.s32.totalorder %s2261_s23, 124  ;;  %v437_v35 = vadd.s32 (!%p2264_p4), %v3442_v31, %v307_v17  ;;  %v438_v36 = vadd.s32 (!%p2264_p4), %v3442_v31, %v308_v18  ;;  %v469_v37 = vadd.s32 (!%p2264_p4), %v3442_v31, %v339_v19  ;;  %v470_v38 = vadd.s32 (!%p2264_p4), %v3442_v31, %v340_v20 }
   0xe   :  { %v421_v39 = vadd.s32 (!%p2264_p4), %v3442_v31, %v3402_v8  ;;  %v422_v40 = vadd.s32 (!%p2264_p4), %v3442_v31, %v3431_v23  ;;  %v453_v41 = vadd.s32 (!%p2264_p4), %v3442_v31, %v323_v24  ;;  %v454_v42 = vadd.s32 (!%p2264_p4), %v3442_v31, %v324_v25 }
   0xf   :  { %s4506_s22 = smov (!%p106_p2, %s2259_s22), 7  ;;  %s4508_s23 = smov (!%p131_p3, %s2261_s23), 124 }
  0x10   :  { %s108_s25 = scalar_lea.vmem %s4496_s2, %s4506_s22  ;;  %s2262_s26 = sshll.u32 %s4508_s23, 3  ;;  %vm565_vm0 = vcmp.lt.s32.totalorder (!%p2264_p4), %v437_v35, 1000  ;;  %vm566_vm1 = vcmp.lt.s32.totalorder (!%p2264_p4), %v438_v36, 1000  ;;  %vm597_vm2 = vcmp.lt.s32.totalorder (!%p2264_p4), %v469_v37, 1000  ;;  %vm598_vm3 = vcmp.lt.s32.totalorder (!%p2264_p4), %v470_v38, 1000 }
  0x11   :  { %s3384_s29 = scalar_lea.vmem %s4497_s3, %s2262_s26  ;;  %vm3053_vm4 = vmpackc.low (!%p2264_p4), %vm566_vm1, %vm565_vm0  ;;  %vm549_vm5 = vcmp.lt.s32.totalorder (!%p2264_p4), %v421_v39, 1000  ;;  %vm550_vm6 = vcmp.lt.s32.totalorder (!%p2264_p4), %v422_v40, 1000  ;;  %vm581_vm7 = vcmp.lt.s32.totalorder (!%p2264_p4), %v453_v41, 1000  ;;  %vm582_vm8 = vcmp.lt.s32.totalorder (!%p2264_p4), %v454_v42, 1000 }
  0x12   :  { %v178_v1 = vld [vmem:[%s3384_s29 + $0x80] sm:$0xff]  ;;  %v179_v2 = vld [vmem:[%s3384_s29 + $0x88] sm:$0xff]  ;;  %v3415_v15 = vld [vmem:[%s3384_s29 + $0x90] sm:$0xff]  ;;  %v439_v45 = vadd.s32 %v3442_v31, %v309_v26  ;;  %v440_v46 = vadd.s32 %v3442_v31, %v310_v27  ;;  %v471_v47 = vadd.s32 %v3442_v31, %v341_v29  ;;  %v472_v48 = vadd.s32 %v3442_v31, %v342_v30 }
  0x13   :  { %v210_v4 = vld [vmem:[%s3384_s29 + $0x180] sm:$0xff]  ;;  %v211_v5 = vld [vmem:[%s3384_s29 + $0x188] sm:$0xff]  ;;  %v3052_v11 = vpack.c.bf16 %v179_v2, %v178_v1  ;;  %v3418_v16 = vld [vmem:[%s3384_s29 + $0x98] sm:$0xff]  ;;  %v423_v51 = vadd.s32 %v3442_v31, %v3447_v33  ;;  %v424_v52 = vadd.s32 %v3442_v31, %v3450_v34  ;;  %v455_v58 = vadd.s32 %v3442_v31, %v325_v54 }
  0x14   :  { %v3396_v6 = vld [vmem:[%s3384_s29] sm:$0xff]  ;;  %v3399_v7 = vld [vmem:[%s3384_s29 + $0x8] sm:$0xff]  ;;  %v3100_v12 = vpack.c.bf16 %v211_v5, %v210_v4  ;;  %v3425_v21 = vld [vmem:[%s3384_s29 + $0x190] sm:$0xff]  ;;  %v3058_v28 = vpack.c.bf16 %v3418_v16, %v3415_v15  ;;  %vm567_vm12 = vcmp.lt.s32.totalorder %v439_v45, 1000  ;;  %vm568_vm13 = vcmp.lt.s32.totalorder %v440_v46, 1000 }
  0x15   :  { %v3405_v9 = vld [vmem:[%s3384_s29 + $0x100] sm:$0xff]  ;;  %v3408_v10 = vld [vmem:[%s3384_s29 + $0x108] sm:$0xff]  ;;  %v3055_v13 = vpack.c.bf16 %v3399_v7, %v3396_v6  ;;  %v3428_v22 = vld [vmem:[%s3384_s29 + $0x198] sm:$0xff]  ;;  %3054 = vmatprep.subr.msk.bf16.mxu0 %vm3053_vm4, %v3052_v11  ;;  %vm599_vm14 = vcmp.lt.s32.totalorder %v471_v47, 1000  ;;  %vm600_vm15 = vcmp.lt.s32.totalorder %v472_v48, 1000  ;;  %vm551_vm1 = vcmp.lt.s32.totalorder %v423_v51, 1000 }
  0x16   :  { %v3103_v14 = vpack.c.bf16 %v3408_v10, %v3405_v9  ;;  %v3106_v32 = vpack.c.bf16 %v3428_v22, %v3425_v21  ;;  %v164_v43 = vld [vmem:[%s3384_s29 + $0x10] sm:$0xff]  ;;  %v165_v44 = vld [vmem:[%s3384_s29 + $0x18] sm:$0xff]  ;;  %vm3101_vm9 = vmpackc.low %vm598_vm3, %vm597_vm2  ;;  %vm552_vm2 = vcmp.lt.s32.totalorder %v424_v52, 1000  ;;  %v311_v62 = vadd.s32 160, %v3402_v8 }
  0x17   :  { %v196_v49 = vld [vmem:[%s3384_s29 + $0x110] sm:$0xff]  ;;  %v197_v50 = vld [vmem:[%s3384_s29 + $0x118] sm:$0xff]  ;;  %3102 = vmatprep.subr.msk.bf16.mxu1 %vm3101_vm9, %v3100_v12  ;;  %vm3056_vm10 = vmpackc.low %vm550_vm6, %vm549_vm5  ;;  %v3061_v53 = vpack.c.bf16 %v165_v44, %v164_v43  ;;  %v312_v63 = vadd.s32 168, %v3402_v8  ;;  %v456_v1 = vadd.s32 %v3442_v31, %v326_v57  ;;  %vm583_vm5 = vcmp.lt.s32.totalorder %v455_v58, 1000 }
  0x18   :  { %v182_v55 = vld [vmem:[%s3384_s29 + $0xa0] sm:$0xff]  ;;  %v183_v56 = vld [vmem:[%s3384_s29 + $0xa8] sm:$0xff]  ;;  %3057 = vmatpush3.bf16.msk.msra.mxu0 %vm3056_vm10, %v3055_v13  ;;  %vm3104_vm11 = vmpackc.low %vm582_vm8, %vm581_vm7  ;;  %v3109_v61 = vpack.c.bf16 %v197_v50, %v196_v49  ;;  %v343_v2 = vadd.s32 416, %v3402_v8  ;;  %v344_v4 = vadd.s32 424, %v3402_v8  ;;  %v441_v7 = vadd.s32 %v3442_v31, %v311_v62 }
  0x19   :  { %3105 = vmatpush3.bf16.msk.msra.mxu1 %vm3104_vm11, %v3103_v14  ;;  %vm3059_vm0 = vmpackc.low %vm568_vm13, %vm567_vm12  ;;  %v214_v59 = vld [vmem:[%s3384_s29 + $0x1a0] sm:$0xff]  ;;  %v215_v60 = vld [vmem:[%s3384_s29 + $0x1a8] sm:$0xff]  ;;  %v3064_v0 = vpack.c.bf16 %v183_v56, %v182_v55  ;;  %v442_v9 = vadd.s32 %v3442_v31, %v312_v63  ;;  %v3496_v11 = vadd.s32 32, %v3402_v8  ;;  %vm584_vm6 = vcmp.lt.s32.totalorder %v456_v1, 1000 }
  0x1a   :  { %3060 = vmatprep.subr.msk.bf16.mxu0 %vm3059_vm0, %v3058_v28  ;;  %vm3107_vm3 = vmpackc.low %vm600_vm15, %vm599_vm14  ;;  %v166_v5 = vld [vmem:[%s3384_s29 + $0x20] sm:$0xff]  ;;  %v167_v6 = vld [vmem:[%s3384_s29 + $0x28] sm:$0xff]  ;;  %v3112_v10 = vpack.c.bf16 %v215_v60, %v214_v59  ;;  %v473_v12 = vadd.s32 %v3442_v31, %v343_v2  ;;  %v474_v13 = vadd.s32 %v3442_v31, %v344_v4  ;;  %v3501_v14 = vadd.s32 40, %v3402_v8 }
  0x1b   :  { %3108 = vmatprep.subr.msk.bf16.mxu1 %vm3107_vm3, %v3106_v32  ;;  %vm3062_vm4 = vmpackc.low %vm552_vm2, %vm551_vm1  ;;  %v198_v15 = vld [vmem:[%s3384_s29 + $0x120] sm:$0xff]  ;;  %v199_v16 = vld [vmem:[%s3384_s29 + $0x128] sm:$0xff]  ;;  %vm569_vm8 = vcmp.lt.s32.totalorder %v441_v7, 1000  ;;  %vm570_vm9 = vcmp.lt.s32.totalorder %v442_v9, 1000  ;;  %v425_v17 = vadd.s32 %v3442_v31, %v3496_v11  ;;  %v3067_v18 = vpack.c.bf16 %v167_v6, %v166_v5 }
  0x1c   :  { %3063 = vmatpush3.bf16.msk.msra.mxu0 %vm3062_vm4, %v3061_v53  ;;  %vm3110_vm7 = vmpackc.low %vm584_vm6, %vm583_vm5  ;;  %v184_v19 = vld [vmem:[%s3384_s29 + $0xb0] sm:$0xff]  ;;  %v185_v20 = vld [vmem:[%s3384_s29 + $0xb8] sm:$0xff]  ;;  %vm601_vm11 = vcmp.lt.s32.totalorder %v473_v12, 1000  ;;  %vm602_vm12 = vcmp.lt.s32.totalorder %v474_v13, 1000  ;;  %v426_v21 = vadd.s32 %v3442_v31, %v3501_v14  ;;  %v327_v22 = vadd.s32 288, %v3402_v8 }
  0x1d   :  { %3111 = vmatpush3.bf16.msk.msra.mxu1 %vm3110_vm7, %v3109_v61  ;;  %vm3065_vm10 = vmpackc.low %vm570_vm9, %vm569_vm8  ;;  %vm553_vm14 = vcmp.lt.s32.totalorder %v425_v17, 1000  ;;  %v328_v24 = vadd.s32 296, %v3402_v8  ;;  %v3115_v25 = vpack.c.bf16 %v199_v16, %v198_v15  ;;  %v313_v26 = vadd.s32 176, %v3402_v8  ;;  %v216_v27 = vld [vmem:[%s3384_s29 + $0x1b0] sm:$0xff]  ;;  %v217_v28 = vld [vmem:[%s3384_s29 + $0x1b8] sm:$0xff] }
  0x1e   :  { %3066 = vmatprep.subr.msk.bf16.mxu0 %vm3065_vm10, %v3064_v0  ;;  %vm3113_vm13 = vmpackc.low %vm602_vm12, %vm601_vm11  ;;  %vm554_vm15 = vcmp.lt.s32.totalorder %v426_v21, 1000  ;;  %v457_v29 = vadd.s32 %v3442_v31, %v327_v22  ;;  %v314_v30 = vadd.s32 184, %v3402_v8  ;;  %v3070_v32 = vpack.c.bf16 %v185_v20, %v184_v19  ;;  %v168_v39 = vld [vmem:[%s3384_s29 + $0x30] sm:$0xff]  ;;  %v169_v40 = vld [vmem:[%s3384_s29 + $0x38] sm:$0xff] }
  0x1f   :  { %3114 = vmatprep.subr.msk.bf16.mxu1 %vm3113_vm13, %v3112_v10  ;;  %vm3068_vm0 = vmpackc.low %vm554_vm15, %vm553_vm14  ;;  %v458_v35 = vadd.s32 %v3442_v31, %v328_v24  ;;  %v443_v36 = vadd.s32 %v3442_v31, %v313_v26  ;;  %v345_v37 = vadd.s32 432, %v3402_v8  ;;  %v346_v38 = vadd.s32 440, %v3402_v8  ;;  %v200_v46 = vld [vmem:[%s3384_s29 + $0x130] sm:$0xff]  ;;  %v201_v47 = vld [vmem:[%s3384_s29 + $0x138] sm:$0xff] }
  0x20   :  { %3069 = vmatpush3.bf16.msk.msra.mxu0 %vm3068_vm0, %v3067_v18  ;;  %vm585_vm1 = vcmp.lt.s32.totalorder %v457_v29, 1000  ;;  %v444_v41 = vadd.s32 %v3442_v31, %v314_v30  ;;  %v3118_v42 = vpack.c.bf16 %v217_v28, %v216_v27  ;;  %v3527_v43 = vadd.s32 48, %v3402_v8  ;;  %v186_v51 = vld [vmem:[%s3384_s29 + $0xc0] sm:$0xff]  ;;  %v187_v52 = vld [vmem:[%s3384_s29 + $0xc8] sm:$0xff]  ;;  %v188_v19 = vld [vmem:[%s3384_s29 + $0xd0] sm:$0xff] }
  0x21   :  { %vm586_vm2 = vcmp.lt.s32.totalorder %v458_v35, 1000  ;;  %vm571_vm3 = vcmp.lt.s32.totalorder %v443_v36, 1000  ;;  %v475_v44 = vadd.s32 %v3442_v31, %v345_v37  ;;  %v476_v45 = vadd.s32 %v3442_v31, %v346_v38  ;;  %v218_v58 = vld [vmem:[%s3384_s29 + $0x1c0] sm:$0xff]  ;;  %v219_v59 = vld [vmem:[%s3384_s29 + $0x1c8] sm:$0xff]  ;;  %v189_v20 = vld [vmem:[%s3384_s29 + $0xd8] sm:$0xff] }
  0x22   :  { %vm3116_vm4 = vmpackc.low %vm586_vm2, %vm585_vm1  ;;  %vm572_vm5 = vcmp.lt.s32.totalorder %v444_v41, 1000  ;;  %v3534_v48 = vadd.s32 56, %v3402_v8  ;;  %v427_v49 = vadd.s32 %v3442_v31, %v3527_v43  ;;  %v3073_v50 = vpack.c.bf16 %v169_v40, %v168_v39  ;;  %v170_v4 = vld [vmem:[%s3384_s29 + $0x40] sm:$0xff]  ;;  %v171_v5 = vld [vmem:[%s3384_s29 + $0x48] sm:$0xff] }
  0x23   :  { %3117 = vmatpush3.bf16.msk.msra.mxu1 %vm3116_vm4, %v3115_v25  ;;  %vm3071_vm6 = vmpackc.low %vm572_vm5, %vm571_vm3  ;;  %vm603_vm7 = vcmp.lt.s32.totalorder %v475_v44, 1000  ;;  %vm604_vm8 = vcmp.lt.s32.totalorder %v476_v45, 1000  ;;  %v329_v53 = vadd.s32 304, %v3402_v8  ;;  %v330_v54 = vadd.s32 312, %v3402_v8  ;;  %v202_v13 = vld [vmem:[%s3384_s29 + $0x140] sm:$0xff]  ;;  %v203_v15 = vld [vmem:[%s3384_s29 + $0x148] sm:$0xff] }
  0x24   :  { %3072 = vmatprep.subr.msk.bf16.mxu0 %vm3071_vm6, %v3070_v32  ;;  %vm3119_vm9 = vmpackc.low %vm604_vm8, %vm603_vm7  ;;  %v428_v55 = vadd.s32 %v3442_v31, %v3534_v48  ;;  %vm555_vm10 = vcmp.lt.s32.totalorder %v427_v49, 1000  ;;  %v3121_v56 = vpack.c.bf16 %v201_v47, %v200_v46  ;;  %v315_v57 = vadd.s32 192, %v3402_v8  ;;  %v220_v28 = vld [vmem:[%s3384_s29 + $0x1d0] sm:$0xff]  ;;  %v221_v29 = vld [vmem:[%s3384_s29 + $0x1d8] sm:$0xff] }
  0x25   :  { %3120 = vmatprep.subr.msk.bf16.mxu1 %vm3119_vm9, %v3118_v42  ;;  %v459_v60 = vadd.s32 %v3442_v31, %v329_v53  ;;  %v460_v61 = vadd.s32 %v3442_v31, %v330_v54  ;;  %v316_v62 = vadd.s32 200, %v3402_v8  ;;  %v3076_v63 = vpack.c.bf16 %v187_v52, %v186_v51  ;;  %v172_v38 = vld [vmem:[%s3384_s29 + $0x50] sm:$0xff]  ;;  %v173_v39 = vld [vmem:[%s3384_s29 + $0x58] sm:$0xff] }
  0x26   :  { %vm556_vm11 = vcmp.lt.s32.totalorder %v428_v55, 1000  ;;  %v445_v0 = vadd.s32 %v3442_v31, %v315_v57  ;;  %v347_v1 = vadd.s32 448, %v3402_v8  ;;  %v348_v2 = vadd.s32 456, %v3402_v8  ;;  %v204_v47 = vld [vmem:[%s3384_s29 + $0x150] sm:$0xff]  ;;  %v205_v49 = vld [vmem:[%s3384_s29 + $0x158] sm:$0xff]  ;;  %v191_v57 = vld [vmem:[%s3384_s29 + $0xe8] sm:$0xff] }
  0x27   :  { %vm3074_vm12 = vmpackc.low %vm556_vm11, %vm555_vm10  ;;  %vm587_vm13 = vcmp.lt.s32.totalorder %v459_v60, 1000  ;;  %vm588_vm14 = vcmp.lt.s32.totalorder %v460_v61, 1000  ;;  %v446_v6 = vadd.s32 %v3442_v31, %v316_v62  ;;  %v3124_v7 = vpack.c.bf16 %v219_v59, %v218_v58  ;;  %v222_v61 = vld [vmem:[%s3384_s29 + $0x1e0] sm:$0xff]  ;;  %v223_v62 = vld [vmem:[%s3384_s29 + $0x1e8] sm:$0xff] }
  0x28   :  { %3075 = vmatpush3.bf16.msk.msra.mxu0 %vm3074_vm12, %v3073_v50  ;;  %vm3122_vm15 = vmpackc.low %vm588_vm14, %vm587_vm13  ;;  %vm573_vm0 = vcmp.lt.s32.totalorder %v445_v0, 1000  ;;  %v477_v9 = vadd.s32 %v3442_v31, %v347_v1  ;;  %v478_v10 = vadd.s32 %v3442_v31, %v348_v2  ;;  %v3560_v12 = vadd.s32 64, %v3402_v8 }
  0x29   :  { %3123 = vmatpush3.bf16.msk.msra.mxu1 %vm3122_vm15, %v3121_v56  ;;  %vm574_vm1 = vcmp.lt.s32.totalorder %v446_v6, 1000  ;;  %v3565_v16 = vadd.s32 72, %v3402_v8  ;;  %v3079_v17 = vpack.c.bf16 %v171_v5, %v170_v4  ;;  %v331_v18 = vadd.s32 320, %v3402_v8  ;;  %v190_v56 = vld [vmem:[%s3384_s29 + $0xe0] sm:$0xff]  ;;  %v175_v6 = vld [vmem:[%s3384_s29 + $0x68] sm:$0xff] }
  0x2a   :  { %vm3077_vm2 = vmpackc.low %vm574_vm1, %vm573_vm0  ;;  %vm605_vm3 = vcmp.lt.s32.totalorder %v477_v9, 1000  ;;  %vm606_vm4 = vcmp.lt.s32.totalorder %v478_v10, 1000  ;;  %v429_v21 = vadd.s32 %v3442_v31, %v3560_v12  ;;  %v332_v22 = vadd.s32 328, %v3402_v8  ;;  %v174_v5 = vld [vmem:[%s3384_s29 + $0x60] sm:$0xff] }
  0x2b   :  { %3078 = vmatprep.subr.msk.bf16.mxu0 %vm3077_vm2, %v3076_v63  ;;  %vm3125_vm5 = vmpackc.low %vm606_vm4, %vm605_vm3  ;;  %v430_v24 = vadd.s32 %v3442_v31, %v3565_v16  ;;  %v461_v25 = vadd.s32 %v3442_v31, %v331_v18  ;;  %v3127_v26 = vpack.c.bf16 %v203_v15, %v202_v13  ;;  %v317_v27 = vadd.s32 208, %v3402_v8  ;;  %v206_v18 = vld [vmem:[%s3384_s29 + $0x160] sm:$0xff] }
  0x2c   :  { %3126 = vmatprep.subr.msk.bf16.mxu1 %vm3125_vm5, %v3124_v7  ;;  %vm557_vm6 = vcmp.lt.s32.totalorder %v429_v21, 1000  ;;  %v462_v30 = vadd.s32 %v3442_v31, %v332_v22  ;;  %v318_v32 = vadd.s32 216, %v3402_v8  ;;  %v3082_v35 = vpack.c.bf16 %v189_v20, %v188_v19  ;;  %v207_v19 = vld [vmem:[%s3384_s29 + $0x168] sm:$0xff] }
  0x2d   :  { %vm558_vm7 = vcmp.lt.s32.totalorder %v430_v24, 1000  ;;  %vm589_vm8 = vcmp.lt.s32.totalorder %v461_v25, 1000  ;;  %v447_v36 = vadd.s32 %v3442_v31, %v317_v27  ;;  %v349_v37 = vadd.s32 464, %v3402_v8  ;;  %v192_v27 = vld [vmem:[%s3384_s29 + $0xf0] sm:$0xff] }
  0x2e   :  { %vm3080_vm9 = vmpackc.low %vm558_vm7, %vm557_vm6  ;;  %vm590_vm10 = vcmp.lt.s32.totalorder %v462_v30, 1000  ;;  %v448_v40 = vadd.s32 %v3442_v31, %v318_v32  ;;  %v350_v41 = vadd.s32 472, %v3402_v8  ;;  %v3130_v42 = vpack.c.bf16 %v221_v29, %v220_v28  ;;  %v193_v28 = vld [vmem:[%s3384_s29 + $0xf8] sm:$0xff] }
  0x2f   :  { %3081 = vmatpush3.bf16.msk.msra.mxu0 %vm3080_vm9, %v3079_v17  ;;  %vm3128_vm11 = vmpackc.low %vm590_vm10, %vm589_vm8  ;;  %vm575_vm12 = vcmp.lt.s32.totalorder %v447_v36, 1000  ;;  %v479_v44 = vadd.s32 %v3442_v31, %v349_v37  ;;  %v3589_v45 = vadd.s32 80, %v3402_v8  ;;  %v3592_v46 = vadd.s32 88, %v3402_v8  ;;  %v225_v36 = vld [vmem:[%s3384_s29 + $0x1f8] sm:$0xff] }
  0x30   :  { %3129 = vmatpush3.bf16.msk.msra.mxu1 %vm3128_vm11, %v3127_v26  ;;  %vm576_vm13 = vcmp.lt.s32.totalorder %v448_v40, 1000  ;;  %v480_v50 = vadd.s32 %v3442_v31, %v350_v41  ;;  %v3085_v51 = vpack.c.bf16 %v173_v39, %v172_v38  ;;  %v333_v52 = vadd.s32 336, %v3402_v8 }
  0x31   :  { %vm3083_vm14 = vmpackc.low %vm576_vm13, %vm575_vm12  ;;  %vm607_vm15 = vcmp.lt.s32.totalorder %v479_v44, 1000  ;;  %v431_v53 = vadd.s32 %v3442_v31, %v3589_v45  ;;  %v432_v54 = vadd.s32 %v3442_v31, %v3592_v46  ;;  %v334_v55 = vadd.s32 344, %v3402_v8  ;;  %v177_v44 = vld [vmem:[%s3384_s29 + $0x78] sm:$0xff] }
  0x32   :  { %3084 = vmatprep.subr.msk.bf16.mxu0 %vm3083_vm14, %v3082_v35  ;;  %vm608_vm0 = vcmp.lt.s32.totalorder %v480_v50, 1000  ;;  %v463_v58 = vadd.s32 %v3442_v31, %v333_v52  ;;  %v3133_v59 = vpack.c.bf16 %v205_v49, %v204_v47  ;;  %v319_v60 = vadd.s32 224, %v3402_v8  ;;  %v224_v35 = vld [vmem:[%s3384_s29 + $0x1f0] sm:$0xff] }
  0x33   :  { %vm3131_vm1 = vmpackc.low %vm608_vm0, %vm607_vm15  ;;  %vm559_vm2 = vcmp.lt.s32.totalorder %v431_v53, 1000  ;;  %vm560_vm3 = vcmp.lt.s32.totalorder %v432_v54, 1000  ;;  %v464_v63 = vadd.s32 %v3442_v31, %v334_v55  ;;  %v320_v0 = vadd.s32 232, %v3402_v8  ;;  %v208_v54 = vld [vmem:[%s3384_s29 + $0x170] sm:$0xff]  ;;  %v209_v55 = vld [vmem:[%s3384_s29 + $0x178] sm:$0xff] }
  0x34   :  { %3132 = vmatprep.subr.msk.bf16.mxu1 %vm3131_vm1, %v3130_v42  ;;  %vm3086_vm4 = vmpackc.low %vm560_vm3, %vm559_vm2  ;;  %vm591_vm5 = vcmp.lt.s32.totalorder %v463_v58, 1000  ;;  %v449_v1 = vadd.s32 %v3442_v31, %v319_v60  ;;  %v3088_v2 = vpack.c.bf16 %v191_v57, %v190_v56  ;;  %v351_v4 = vadd.s32 480, %v3402_v8  ;;  %v176_v42 = vld [vmem:[%s3384_s29 + $0x70] sm:$0xff] }
  0x35   :  { %3087 = vmatpush3.bf16.msk.msra.mxu0 %vm3086_vm4, %v3085_v51  ;;  %vm592_vm6 = vcmp.lt.s32.totalorder %v464_v63, 1000  ;;  %v450_v7 = vadd.s32 %v3442_v31, %v320_v0  ;;  %v352_v9 = vadd.s32 488, %v3402_v8  ;;  %v3136_v10 = vpack.c.bf16 %v223_v62, %v222_v61  ;;  %v3668_v62 = vld [vmem:[%s108_s25] sm:$0xff] }
  0x36   :  { %vm3134_vm7 = vmpackc.low %vm592_vm6, %vm591_vm5  ;;  %vm577_vm8 = vcmp.lt.s32.totalorder %v449_v1, 1000  ;;  %v481_v13 = vadd.s32 %v3442_v31, %v351_v4  ;;  %v3619_v15 = vadd.s32 96, %v3402_v8  ;;  %v3622_v17 = vadd.s32 104, %v3402_v8 }
  0x37   :  { %3135 = vmatpush3.bf16.msk.msra.mxu1 %vm3134_vm7, %v3133_v59  ;;  %vm578_vm9 = vcmp.lt.s32.totalorder %v450_v7, 1000  ;;  %v482_v20 = vadd.s32 %v3442_v31, %v352_v9  ;;  %v3091_v21 = vpack.c.bf16 %v175_v6, %v174_v5  ;;  %v335_v22 = vadd.s32 352, %v3402_v8  ;;  %v242_v5 = vld [vmem:[%s3384_s29 + $0x280] sm:$0xff]  ;;  %v243_v6 = vld [vmem:[%s3384_s29 + $0x288] sm:$0xff] }
  0x38   :  { %vm3089_vm10 = vmpackc.low %vm578_vm9, %vm577_vm8  ;;  %vm609_vm11 = vcmp.lt.s32.totalorder %v481_v13, 1000  ;;  %v433_v24 = vadd.s32 %v3442_v31, %v3619_v15  ;;  %v434_v25 = vadd.s32 %v3442_v31, %v3622_v17  ;;  %v336_v26 = vadd.s32 360, %v3402_v8 }
  0x39   :  { %3090 = vmatprep.subr.msk.bf16.mxu0 %vm3089_vm10, %v3088_v2  ;;  %vm610_vm12 = vcmp.lt.s32.totalorder %v482_v20, 1000  ;;  %v465_v29 = vadd.s32 %v3442_v31, %v335_v22  ;;  %v3139_v30 = vpack.c.bf16 %v207_v19, %v206_v18  ;;  %v321_v32 = vadd.s32 240, %v3402_v8  ;;  %v226_v20 = vld [vmem:[%s3384_s29 + $0x200] sm:$0xff] }
  0x3a   :  { %vm3137_vm13 = vmpackc.low %vm610_vm12, %vm609_vm11  ;;  %vm561_vm14 = vcmp.lt.s32.totalorder %v433_v24, 1000  ;;  %vm562_vm15 = vcmp.lt.s32.totalorder %v434_v25, 1000  ;;  %v466_v37 = vadd.s32 %v3442_v31, %v336_v26  ;;  %v322_v38 = vadd.s32 248, %v3402_v8 }
  0x3b   :  { %3138 = vmatprep.subr.msk.bf16.mxu1 %vm3137_vm13, %v3136_v10  ;;  %vm3092_vm0 = vmpackc.low %vm562_vm15, %vm561_vm14  ;;  %vm593_vm1 = vcmp.lt.s32.totalorder %v465_v29, 1000  ;;  %v451_v39 = vadd.s32 %v3442_v31, %v321_v32  ;;  %v3094_v40 = vpack.c.bf16 %v193_v28, %v192_v27  ;;  %v353_v41 = vadd.s32 496, %v3402_v8  ;;  %v275_v32 = vld [vmem:[%s3384_s29 + $0x388] sm:$0xff] }
  0x3c   :  { %3093 = vmatpush3.bf16.msk.msra.mxu0 %vm3092_vm0, %v3091_v21  ;;  %vm594_vm2 = vcmp.lt.s32.totalorder %v466_v37, 1000  ;;  %v452_v47 = vadd.s32 %v3442_v31, %v322_v38  ;;  %v354_v49 = vadd.s32 504, %v3402_v8  ;;  %v3142_v50 = vpack.c.bf16 %v225_v36, %v224_v35  ;;  %v227_v21 = vld [vmem:[%s3384_s29 + $0x208] sm:$0xff] }
  0x3d   :  { %vm3140_vm3 = vmpackc.low %vm594_vm2, %vm593_vm1  ;;  %vm579_vm4 = vcmp.lt.s32.totalorder %v451_v39, 1000  ;;  %v483_v51 = vadd.s32 %v3442_v31, %v353_v41  ;;  %v3649_v52 = vadd.s32 112, %v3402_v8  ;;  %v3652_v53 = vadd.s32 120, %v3402_v8  ;;  %v258_v39 = vld [vmem:[%s3384_s29 + $0x300] sm:$0xff] }
  0x3e   :  { %3141 = vmatpush3.bf16.msk.msra.mxu1 %vm3140_vm3, %v3139_v30  ;;  %vm580_vm5 = vcmp.lt.s32.totalorder %v452_v47, 1000  ;;  %v484_v56 = vadd.s32 %v3442_v31, %v354_v49  ;;  %v3097_v57 = vpack.c.bf16 %v177_v44, %v176_v42  ;;  %v337_v58 = vadd.s32 368, %v3402_v8  ;;  %v274_v30 = vld [vmem:[%s3384_s29 + $0x380] sm:$0xff] }
  0x3f   :  { %vm3095_vm6 = vmpackc.low %vm580_vm5, %vm579_vm4  ;;  %vm611_vm7 = vcmp.lt.s32.totalorder %v483_v51, 1000  ;;  %v435_v59 = vadd.s32 %v3442_v31, %v3649_v52  ;;  %v436_v60 = vadd.s32 %v3442_v31, %v3652_v53  ;;  %v338_v61 = vadd.s32 376, %v3402_v8 }
  0x40   :  { %3096 = vmatprep.subr.msk.bf16.mxu0 %vm3095_vm6, %v3094_v40  ;;  %vm612_vm8 = vcmp.lt.s32.totalorder %v484_v56, 1000  ;;  %v467_v63 = vadd.s32 %v3442_v31, %v337_v58  ;;  %v3145_v0 = vpack.c.bf16 %v209_v55, %v208_v54  ;;  %v1071_v1 = vsub.s32 1, %v3402_v8  ;;  %v259_v40 = vld [vmem:[%s3384_s29 + $0x308] sm:$0xff]  ;;  %v244_v56 = vld [vmem:[%s3384_s29 + $0x290] sm:$0xff] }
  0x41   :  { %vm3143_vm9 = vmpackc.low %vm612_vm8, %vm611_vm7  ;;  %vm563_vm10 = vcmp.lt.s32.totalorder %v435_v59, 1000  ;;  %vm564_vm11 = vcmp.lt.s32.totalorder %v436_v60, 1000  ;;  %v468_v2 = vadd.s32 %v3442_v31, %v338_v61  ;;  %v1079_v4 = vsub.s32 3, %v3402_v8  ;;  %v228_v59 = vld [vmem:[%s3384_s29 + $0x210] sm:$0xff]  ;;  %v229_v60 = vld [vmem:[%s3384_s29 + $0x218] sm:$0xff] }
  0x42   :  { %3144 = vmatprep.subr.msk.bf16.mxu1 %vm3143_vm9, %v3142_v50  ;;  %vm3098_vm12 = vmpackc.low %vm564_vm11, %vm563_vm10  ;;  %vm595_vm13 = vcmp.lt.s32.totalorder %v467_v63, 1000  ;;  %v3677_v7 = vrot.slane %v3668_v62, %v1071_v1  ;;  %v1067_v9 = vsub.s32 0, %v3402_v8  ;;  %v1075_v10 = vsub.s32 2, %v3402_v8  ;;  %v276_v63 = vld [vmem:[%s3384_s29 + $0x390] sm:$0xff] }
  0x43   :  { %3099 = vmatpush3.bf16.msk.msra.mxu0 %vm3098_vm12, %v3097_v57  ;;  %vm596_vm14 = vcmp.lt.s32.totalorder %v468_v2, 1000  ;;  %v3682_v13 = vrot.slane %v3668_v62, %v1079_v4  ;;  %v371_v18 = vadd.s32 640, %v3402_v8  ;;  %v372_v19 = vadd.s32 648, %v3402_v8  ;;  %v245_v57 = vld [vmem:[%s3384_s29 + $0x298] sm:$0xff] }
  0x44   :  { %vm3146_vm15 = vmpackc.low %vm596_vm14, %vm595_vm13  ;;  %vm1098_vm0 = vcmp.eq.s32.totalorder %v3402_v8, %v3677_v7  ;;  %v3691_v22 = vrot.slane %v3668_v62, %v1067_v9  ;;  %v3694_v24 = vrot.slane %v3668_v62, %v1075_v10  ;;  %v3148_v25 = vpack.c.bf16 %v243_v6, %v242_v5 }
  0x45   :  { %3147 = vmatpush3.bf16.msk.msra.mxu1 %vm3146_vm15, %v3145_v0  ;;  %v3339_v26 = vmov 1.0   ;;  %vm1100_vm1 = vcmp.eq.s32.totalorder %v3402_v8, %v3682_v13  ;;  %v501_v27 = vadd.s32 %v3442_v31, %v371_v18  ;;  %v502_v28 = vadd.s32 %v3442_v31, %v372_v19  ;;  %v277_v0 = vld [vmem:[%s3384_s29 + $0x398] sm:$0xff] }
  0x46   :  { %2426 = vmatprep.mubr.msk.f32.mxu0 %vm1098_vm0, %v3339_v26  ;;  %v355_v29 = vadd.s32 512, %v3402_v8  ;;  %2490 = vmatprep.mubr.msk.f32.mxu1 %vm1100_vm1, %v3339_v26  ;;  %vm1097_vm2 = vcmp.eq.s32.totalorder %v3402_v8, %v3691_v22  ;;  %vm1099_vm3 = vcmp.eq.s32.totalorder %v3402_v8, %v3694_v24  ;;  %v356_v35 = vadd.s32 520, %v3402_v8 }
  0x47   :  { %v3151_v36 = vpack.c.bf16 %v227_v21, %v226_v20  ;;  %2427 = vmatmul.mubr.msk.f32.vlgmr.msra.gmra.mrb[0].mxu0 %vm1097_vm2, %v3339_v26  ;;  %vm629_vm4 = vcmp.lt.s32.totalorder %v501_v27, 1000  ;;  %vm630_vm5 = vcmp.lt.s32.totalorder %v502_v28, 1000  ;;  %v403_v38 = vadd.s32 896, %v3402_v8  ;;  %v260_v28 = vld [vmem:[%s3384_s29 + $0x310] sm:$0xff] }
  0x48   :  { %v485_v37 = vadd.s32 %v3442_v31, %v355_v29  ;;  %2491 = vmatmul.mubr.msk.f32.vlgmr.msra.gmra.mrb[0].mxu1 %vm1099_vm3, %v3339_v26  ;;  %vm3149_vm6 = vmpackc.low %vm630_vm5, %vm629_vm4  ;;  %v486_v41 = vadd.s32 %v3442_v31, %v356_v35  ;;  %v404_v42 = vadd.s32 904, %v3402_v8  ;;  %v3196_v44 = vpack.c.bf16 %v275_v32, %v274_v30  ;;  %v261_v29 = vld [vmem:[%s3384_s29 + $0x318] sm:$0xff] }
  0x49   :  { %vm1106_vm7 = vcmp.eq.s32.totalorder %v3431_v23, %v3677_v7  ;;  %3150 = vmatprep.subr.msk.bf16.mxu0 %vm3149_vm6, %v3148_v25  ;;  %v533_v47 = vadd.s32 %v3442_v31, %v403_v38  ;;  %vm1108_vm9 = vcmp.eq.s32.totalorder %v3431_v23, %v3682_v13  ;;  %v387_v49 = vadd.s32 768, %v3402_v8  ;;  %v247_v38 = vld [vmem:[%s3384_s29 + $0x2a8] sm:$0xff] }
  0x4a   :  { %vm613_vm8 = vcmp.lt.s32.totalorder %v485_v37, 1000  ;;  %2428 = vmatprep.mubr.msk.f32.mxu0 %vm1106_vm7, %v3339_v26  ;;  %vm614_vm10 = vcmp.lt.s32.totalorder %v486_v41, 1000  ;;  %v534_v50 = vadd.s32 %v3442_v31, %v404_v42  ;;  %2492 = vmatprep.mubr.msk.f32.mxu1 %vm1108_vm9, %v3339_v26  ;;  %v388_v51 = vadd.s32 776, %v3402_v8  ;;  %v246_v37 = vld [vmem:[%s3384_s29 + $0x2a0] sm:$0xff] }
  0x4b   :  { %v3199_v54 = vpack.c.bf16 %v259_v40, %v258_v39  ;;  %vm3152_vm11 = vmpackc.low %vm614_vm10, %vm613_vm8  ;;  %vm661_vm12 = vcmp.lt.s32.totalorder %v533_v47, 1000  ;;  %v517_v55 = vadd.s32 %v3442_v31, %v387_v49  ;;  %vm1105_vm13 = vcmp.eq.s32.totalorder %v3431_v23, %v3691_v22  ;;  %v230_v42 = vld [vmem:[%s3384_s29 + $0x220] sm:$0xff] }
  0x4c   :  { %vm1107_vm14 = vcmp.eq.s32.totalorder %v3431_v23, %v3694_v24  ;;  %3153 = vmatpush3.bf16.msk.msra.mxu0 %vm3152_vm11, %v3151_v36  ;;  %vm662_vm15 = vcmp.lt.s32.totalorder %v534_v50, 1000  ;;  %v518_v58 = vadd.s32 %v3442_v31, %v388_v51  ;;  %vm1114_vm0 = vcmp.eq.s32.totalorder %v3447_v33, %v3677_v7  ;;  %v278_v49 = vld [vmem:[%s3384_s29 + $0x3a0] sm:$0xff]  ;;  %v279_v50 = vld [vmem:[%s3384_s29 + $0x3a8] sm:$0xff] }
  0x4d   :  { %2493 = vmatmul.mubr.msk.f32.gmra.mrb[2].mxu1 %vm1107_vm14, %v3339_v26  ;;  %vm1116_vm1 = vcmp.eq.s32.totalorder %v3447_v33, %v3682_v13  ;;  %vm3197_vm2 = vmpackc.low %vm662_vm15, %vm661_vm12  ;;  %vm645_vm3 = vcmp.lt.s32.totalorder %v517_v55, 1000  ;;  %2429 = vmatmul.mubr.msk.f32.gmra.mrb[2].mxu0 %vm1105_vm13, %v3339_v26  ;;  %vm1113_vm4 = vcmp.eq.s32.totalorder %v3447_v33, %v3691_v22  ;;  %vm1115_vm5 = vcmp.eq.s32.totalorder %v3447_v33, %v3694_v24 }
  0x4e   :  { %2494 = vmatprep.mubr.msk.f32.mxu1 %vm1116_vm1, %v3339_v26  ;;  %v373_v61 = vadd.s32 656, %v3402_v8  ;;  %3198 = vmatprep.subr.msk.bf16.mxu1 %vm3197_vm2, %v3196_v44  ;;  %vm646_vm6 = vcmp.lt.s32.totalorder %v518_v58, 1000  ;;  %v374_v1 = vadd.s32 664, %v3402_v8  ;;  %v3154_v2 = vpack.c.bf16 %v245_v57, %v244_v56  ;;  %v231_v44 = vld [vmem:[%s3384_s29 + $0x228] sm:$0xff] }
  0x4f   :  { %2430 = vmatprep.mubr.msk.f32.mxu0 %vm1114_vm0, %v3339_v26  ;;  %v357_v4 = vadd.s32 528, %v3402_v8  ;;  %vm3200_vm7 = vmpackc.low %vm646_vm6, %vm645_vm3  ;;  %v358_v6 = vadd.s32 536, %v3402_v8  ;;  %v3157_v9 = vpack.c.bf16 %v229_v60, %v228_v59  ;;  %v405_v10 = vadd.s32 912, %v3402_v8 }
  0x50   :  { %v503_v5 = vadd.s32 %v3442_v31, %v373_v61  ;;  %3201 = vmatpush3.bf16.msk.msra.mxu1 %vm3200_vm7, %v3199_v54  ;;  %v504_v18 = vadd.s32 %v3442_v31, %v374_v1  ;;  %v406_v20 = vadd.s32 920, %v3402_v8  ;;  %v3202_v21 = vpack.c.bf16 %v277_v0, %v276_v63  ;;  %v262_v63 = vld [vmem:[%s3384_s29 + $0x320] sm:$0xff]  ;;  %v263_v0 = vld [vmem:[%s3384_s29 + $0x328] sm:$0xff] }
  0x51   :  { %v487_v19 = vadd.s32 %v3442_v31, %v357_v4  ;;  %2431 = vmatmul.mubr.msk.f32.gmra.mrb[4].mxu0 %vm1113_vm4, %v3339_v26  ;;  %2495 = vmatmul.mubr.msk.f32.gmra.mrb[4].mxu1 %vm1115_vm5, %v3339_v26  ;;  %v488_v25 = vadd.s32 %v3442_v31, %v358_v6  ;;  %v535_v27 = vadd.s32 %v3442_v31, %v405_v10  ;;  %v389_v32 = vadd.s32 784, %v3402_v8 }
  0x52   :  { %vm631_vm8 = vcmp.lt.s32.totalorder %v503_v5, 1000  ;;  %vm1122_vm9 = vcmp.eq.s32.totalorder %v3450_v34, %v3677_v7  ;;  %vm632_vm10 = vcmp.lt.s32.totalorder %v504_v18, 1000  ;;  %v536_v30 = vadd.s32 %v3442_v31, %v406_v20  ;;  %v249_v20 = vld [vmem:[%s3384_s29 + $0x2b8] sm:$0xff] }
  0x53   :  { %vm615_vm11 = vcmp.lt.s32.totalorder %v487_v19, 1000  ;;  %2432 = vmatprep.mubr.msk.f32.mxu0 %vm1122_vm9, %v3339_v26  ;;  %vm1124_vm12 = vcmp.eq.s32.totalorder %v3450_v34, %v3682_v13  ;;  %vm3155_vm13 = vmpackc.low %vm632_vm10, %vm631_vm8  ;;  %vm616_vm14 = vcmp.lt.s32.totalorder %v488_v25, 1000  ;;  %vm663_vm15 = vcmp.lt.s32.totalorder %v535_v27, 1000  ;;  %v248_v19 = vld [vmem:[%s3384_s29 + $0x2b0] sm:$0xff]  ;;  %v233_v27 = vld [vmem:[%s3384_s29 + $0x238] sm:$0xff] }
  0x54   :  { %2496 = vmatprep.mubr.msk.f32.mxu1 %vm1124_vm12, %v3339_v26  ;;  %v390_v35 = vadd.s32 792, %v3402_v8  ;;  %3156 = vmatprep.subr.msk.bf16.mxu0 %vm3155_vm13, %v3154_v2  ;;  %vm3158_vm0 = vmpackc.low %vm616_vm14, %vm615_vm11  ;;  %vm664_vm1 = vcmp.lt.s32.totalorder %v536_v30, 1000  ;;  %v3205_v36 = vpack.c.bf16 %v261_v29, %v260_v28  ;;  %vm1121_vm2 = vcmp.eq.s32.totalorder %v3450_v34, %v3691_v22  ;;  %v232_v25 = vld [vmem:[%s3384_s29 + $0x230] sm:$0xff]  ;;  %v281_v30 = vld [vmem:[%s3384_s29 + $0x3b8] sm:$0xff] }
  0x55   :  { %vm1123_vm3 = vcmp.eq.s32.totalorder %v3450_v34, %v3694_v24  ;;  %3159 = vmatpush3.bf16.msk.msra.mxu0 %vm3158_vm0, %v3157_v9  ;;  %vm3203_vm4 = vmpackc.low %vm664_vm1, %vm663_vm15  ;;  %v519_v39 = vadd.s32 %v3442_v31, %v389_v32  ;;  %vm1130_vm5 = vcmp.eq.s32.totalorder %v3496_v11, %v3677_v7  ;;  %v375_v41 = vadd.s32 672, %v3402_v8  ;;  %v280_v29 = vld [vmem:[%s3384_s29 + $0x3b0] sm:$0xff] }
  0x56   :  { %v520_v40 = vadd.s32 %v3442_v31, %v390_v35  ;;  %2497 = vmatmul.mubr.msk.f32.gmra.mrb[6].mxu1 %vm1123_vm3, %v3339_v26  ;;  %3204 = vmatprep.subr.msk.bf16.mxu1 %vm3203_vm4, %v3202_v21  ;;  %vm1132_vm6 = vcmp.eq.s32.totalorder %v3496_v11, %v3682_v13  ;;  %vm1129_vm7 = vcmp.eq.s32.totalorder %v3496_v11, %v3691_v22  ;;  %v376_v47 = vadd.s32 680, %v3402_v8 }
  0x57   :  { %2433 = vmatmul.mubr.msk.f32.gmra.mrb[6].mxu0 %vm1121_vm2, %v3339_v26  ;;  %vm1131_vm8 = vcmp.eq.s32.totalorder %v3496_v11, %v3694_v24  ;;  %vm647_vm9 = vcmp.lt.s32.totalorder %v519_v39, 1000  ;;  %2498 = vmatprep.mubr.msk.f32.mxu1 %vm1132_vm6, %v3339_v26  ;;  %v505_v51 = vadd.s32 %v3442_v31, %v375_v41  ;;  %v3160_v54 = vpack.c.bf16 %v247_v38, %v246_v37 }
  0x58   :  { %vm648_vm10 = vcmp.lt.s32.totalorder %v520_v40, 1000  ;;  %2434 = vmatprep.mubr.msk.f32.mxu0 %vm1130_vm5, %v3339_v26  ;;  %v506_v55 = vadd.s32 %v3442_v31, %v376_v47  ;;  %v359_v56 = vadd.s32 544, %v3402_v8  ;;  %v360_v57 = vadd.s32 552, %v3402_v8 }
  0x59   :  { %vm3206_vm11 = vmpackc.low %vm648_vm10, %vm647_vm9  ;;  %v3163_v58 = vpack.c.bf16 %v231_v44, %v230_v42  ;;  %vm633_vm12 = vcmp.lt.s32.totalorder %v505_v51, 1000  ;;  %v407_v59 = vadd.s32 928, %v3402_v8  ;;  %v408_v60 = vadd.s32 936, %v3402_v8  ;;  %v264_v51 = vld [vmem:[%s3384_s29 + $0x330] sm:$0xff] }
  0x5a   :  { %3207 = vmatpush3.bf16.msk.msra.mxu1 %vm3206_vm11, %v3205_v36  ;;  %v3208_v61 = vpack.c.bf16 %v279_v50, %v278_v49  ;;  %vm634_vm13 = vcmp.lt.s32.totalorder %v506_v55, 1000  ;;  %v489_v1 = vadd.s32 %v3442_v31, %v359_v56  ;;  %v490_v2 = vadd.s32 %v3442_v31, %v360_v57 }
  0x5b   :  { %2435 = vmatmul.mubr.msk.f32.gmra.mrb[8].mxu0 %vm1129_vm7, %v3339_v26  ;;  %2499 = vmatmul.mubr.msk.f32.gmra.mrb[8].mxu1 %vm1131_vm8, %v3339_v26  ;;  %vm1138_vm14 = vcmp.eq.s32.totalorder %v3501_v14, %v3677_v7  ;;  %vm3161_vm15 = vmpackc.low %vm634_vm13, %vm633_vm12  ;;  %v537_v4 = vadd.s32 %v3442_v31, %v407_v59  ;;  %v538_v5 = vadd.s32 %v3442_v31, %v408_v60  ;;  %v391_v6 = vadd.s32 800, %v3402_v8  ;;  %v250_v59 = vld [vmem:[%s3384_s29 + $0x2c0] sm:$0xff]  ;;  %v251_v60 = vld [vmem:[%s3384_s29 + $0x2c8] sm:$0xff] }
  0x5c   :  { %2436 = vmatprep.mubr.msk.f32.mxu0 %vm1138_vm14, %v3339_v26  ;;  %vm1140_vm0 = vcmp.eq.s32.totalorder %v3501_v14, %v3682_v13  ;;  %3162 = vmatprep.subr.msk.bf16.mxu0 %vm3161_vm15, %v3160_v54  ;;  %vm617_vm1 = vcmp.lt.s32.totalorder %v489_v1, 1000  ;;  %vm618_vm2 = vcmp.lt.s32.totalorder %v490_v2, 1000  ;;  %v392_v9 = vadd.s32 808, %v3402_v8  ;;  %v265_v54 = vld [vmem:[%s3384_s29 + $0x338] sm:$0xff]  ;;  %v235_v1 = vld [vmem:[%s3384_s29 + $0x248] sm:$0xff] }
  0x5d   :  { %2500 = vmatprep.mubr.msk.f32.mxu1 %vm1140_vm0, %v3339_v26  ;;  %v3211_v10 = vpack.c.bf16 %v263_v0, %v262_v63  ;;  %vm3164_vm3 = vmpackc.low %vm618_vm2, %vm617_vm1  ;;  %vm665_vm4 = vcmp.lt.s32.totalorder %v537_v4, 1000  ;;  %vm666_vm5 = vcmp.lt.s32.totalorder %v538_v5, 1000  ;;  %v521_v18 = vadd.s32 %v3442_v31, %v391_v6  ;;  %v234_v0 = vld [vmem:[%s3384_s29 + $0x240] sm:$0xff]  ;;  %v283_v6 = vld [vmem:[%s3384_s29 + $0x3c8] sm:$0xff] }
  0x5e   :  { %vm1137_vm6 = vcmp.eq.s32.totalorder %v3501_v14, %v3691_v22  ;;  %3165 = vmatpush3.bf16.msk.msra.mxu0 %vm3164_vm3, %v3163_v58  ;;  %vm3209_vm7 = vmpackc.low %vm666_vm5, %vm665_vm4  ;;  %v522_v21 = vadd.s32 %v3442_v31, %v392_v9  ;;  %vm1139_vm8 = vcmp.eq.s32.totalorder %v3501_v14, %v3694_v24  ;;  %vm1146_vm9 = vcmp.eq.s32.totalorder %v3527_v43, %v3677_v7  ;;  %v282_v5 = vld [vmem:[%s3384_s29 + $0x3c0] sm:$0xff] }
  0x5f   :  { %vm1148_vm10 = vcmp.eq.s32.totalorder %v3527_v43, %v3682_v13  ;;  %3210 = vmatprep.subr.msk.bf16.mxu1 %vm3209_vm7, %v3208_v61  ;;  %vm649_vm11 = vcmp.lt.s32.totalorder %v521_v18, 1000  ;;  %2437 = vmatmul.mubr.msk.f32.gmra.mrb[10].mxu0 %vm1137_vm6, %v3339_v26  ;;  %vm1145_vm12 = vcmp.eq.s32.totalorder %v3527_v43, %v3691_v22  ;;  %vm1147_vm13 = vcmp.eq.s32.totalorder %v3527_v43, %v3694_v24 }
  0x60   :  { %v377_v28 = vadd.s32 688, %v3402_v8  ;;  %vm650_vm14 = vcmp.lt.s32.totalorder %v522_v21, 1000  ;;  %2501 = vmatmul.mubr.msk.f32.gmra.mrb[10].mxu1 %vm1139_vm8, %v3339_v26  ;;  %2438 = vmatprep.mubr.msk.f32.mxu0 %vm1146_vm9, %v3339_v26  ;;  %v378_v32 = vadd.s32 696, %v3402_v8  ;;  %v3166_v35 = vpack.c.bf16 %v249_v20, %v248_v19 }
  0x61   :  { %v361_v36 = vadd.s32 560, %v3402_v8  ;;  %vm3212_vm15 = vmpackc.low %vm650_vm14, %vm649_vm11  ;;  %2502 = vmatprep.mubr.msk.f32.mxu1 %vm1148_vm10, %v3339_v26  ;;  %v362_v38 = vadd.s32 568, %v3402_v8  ;;  %v3169_v39 = vpack.c.bf16 %v233_v27, %v232_v25  ;;  %v409_v40 = vadd.s32 944, %v3402_v8 }
  0x62   :  { %v507_v37 = vadd.s32 %v3442_v31, %v377_v28  ;;  %3213 = vmatpush3.bf16.msk.msra.mxu1 %vm3212_vm15, %v3211_v10  ;;  %v508_v41 = vadd.s32 %v3442_v31, %v378_v32  ;;  %v410_v44 = vadd.s32 952, %v3402_v8  ;;  %v3214_v47 = vpack.c.bf16 %v281_v30, %v280_v29  ;;  %v266_v30 = vld [vmem:[%s3384_s29 + $0x340] sm:$0xff]  ;;  %v267_v32 = vld [vmem:[%s3384_s29 + $0x348] sm:$0xff] }
  0x63   :  { %v491_v42 = vadd.s32 %v3442_v31, %v361_v36  ;;  %2439 = vmatmul.mubr.msk.f32.gmra.mrb[12].mxu0 %vm1145_vm12, %v3339_v26  ;;  %v492_v49 = vadd.s32 %v3442_v31, %v362_v38  ;;  %v539_v50 = vadd.s32 %v3442_v31, %v409_v40  ;;  %vm1154_vm1 = vcmp.eq.s32.totalorder %v3534_v48, %v3677_v7 }
  0x64   :  { %vm635_vm0 = vcmp.lt.s32.totalorder %v507_v37, 1000  ;;  %2503 = vmatmul.mubr.msk.f32.gmra.mrb[12].mxu1 %vm1147_vm13, %v3339_v26  ;;  %vm636_vm2 = vcmp.lt.s32.totalorder %v508_v41, 1000  ;;  %v540_v55 = vadd.s32 %v3442_v31, %v410_v44  ;;  %2440 = vmatprep.mubr.msk.f32.mxu0 %vm1154_vm1, %v3339_v26  ;;  %vm1156_vm4 = vcmp.eq.s32.totalorder %v3534_v48, %v3682_v13  ;;  %v252_v41 = vld [vmem:[%s3384_s29 + $0x2d0] sm:$0xff] }
  0x65   :  { %vm619_vm3 = vcmp.lt.s32.totalorder %v491_v42, 1000  ;;  %vm3167_vm5 = vmpackc.low %vm636_vm2, %vm635_vm0  ;;  %vm620_vm6 = vcmp.lt.s32.totalorder %v492_v49, 1000  ;;  %vm667_vm7 = vcmp.lt.s32.totalorder %v539_v50, 1000  ;;  %2504 = vmatprep.mubr.msk.f32.mxu1 %vm1156_vm4, %v3339_v26  ;;  %v393_v56 = vadd.s32 816, %v3402_v8  ;;  %v253_v42 = vld [vmem:[%s3384_s29 + $0x2d8] sm:$0xff]  ;;  %v236_v49 = vld [vmem:[%s3384_s29 + $0x250] sm:$0xff] }
  0x66   :  { %v394_v57 = vadd.s32 824, %v3402_v8  ;;  %3168 = vmatprep.subr.msk.bf16.mxu0 %vm3167_vm5, %v3166_v35  ;;  %vm3170_vm8 = vmpackc.low %vm620_vm6, %vm619_vm3  ;;  %vm668_vm9 = vcmp.lt.s32.totalorder %v540_v55, 1000  ;;  %v3217_v58 = vpack.c.bf16 %v265_v54, %v264_v51  ;;  %vm1153_vm10 = vcmp.eq.s32.totalorder %v3534_v48, %v3691_v22  ;;  %v237_v50 = vld [vmem:[%s3384_s29 + $0x258] sm:$0xff]  ;;  %v284_v55 = vld [vmem:[%s3384_s29 + $0x3d0] sm:$0xff] }
  0x67   :  { %vm1155_vm11 = vcmp.eq.s32.totalorder %v3534_v48, %v3694_v24  ;;  %3171 = vmatpush3.bf16.msk.msra.mxu0 %vm3170_vm8, %v3169_v39  ;;  %vm3215_vm12 = vmpackc.low %vm668_vm9, %vm667_vm7  ;;  %v523_v61 = vadd.s32 %v3442_v31, %v393_v56  ;;  %vm1162_vm13 = vcmp.eq.s32.totalorder %v3560_v12, %v3677_v7  ;;  %vm1164_vm14 = vcmp.eq.s32.totalorder %v3560_v12, %v3682_v13  ;;  %v285_v56 = vld [vmem:[%s3384_s29 + $0x3d8] sm:$0xff] }
  0x68   :  { %v524_v63 = vadd.s32 %v3442_v31, %v394_v57  ;;  %3216 = vmatprep.subr.msk.bf16.mxu1 %vm3215_vm12, %v3214_v47  ;;  %2441 = vmatmul.mubr.msk.f32.gmra.mrb[14].mxu0 %vm1153_vm10, %v3339_v26  ;;  %vm1161_vm15 = vcmp.eq.s32.totalorder %v3560_v12, %v3691_v22  ;;  %vm1163_vm0 = vcmp.eq.s32.totalorder %v3560_v12, %v3694_v24  ;;  %v379_v2 = vadd.s32 704, %v3402_v8 }
  0x69   :  { %v380_v4 = vadd.s32 712, %v3402_v8  ;;  %vm651_vm1 = vcmp.lt.s32.totalorder %v523_v61, 1000  ;;  %2505 = vmatmul.mubr.msk.f32.gmra.mrb[14].mxu1 %vm1155_vm11, %v3339_v26  ;;  %2442 = vmatprep.mubr.msk.f32.mxu0 %vm1162_vm13, %v3339_v26  ;;  %v3172_v9 = vpack.c.bf16 %v251_v60, %v250_v59  ;;  %v363_v10 = vadd.s32 576, %v3402_v8 }
  0x6a   :  { %vm652_vm2 = vcmp.lt.s32.totalorder %v524_v63, 1000  ;;  %2506 = vmatprep.mubr.msk.f32.mxu1 %vm1164_vm14, %v3339_v26  ;;  %v509_v18 = vadd.s32 %v3442_v31, %v379_v2  ;;  %v364_v20 = vadd.s32 584, %v3402_v8  ;;  %v3175_v21 = vpack.c.bf16 %v235_v1, %v234_v0 }
  0x6b   :  { %vm3218_vm3 = vmpackc.low %vm652_vm2, %vm651_vm1  ;;  %v510_v19 = vadd.s32 %v3442_v31, %v380_v4  ;;  %v493_v25 = vadd.s32 %v3442_v31, %v363_v10  ;;  %v411_v27 = vadd.s32 960, %v3402_v8  ;;  %v412_v28 = vadd.s32 968, %v3402_v8 }
  0x6c   :  { %3219 = vmatpush3.bf16.msk.msra.mxu1 %vm3218_vm3, %v3217_v58  ;;  %v3220_v29 = vpack.c.bf16 %v283_v6, %v282_v5  ;;  %2443 = vmatmul.mubr.msk.f32.gmra.mrb[16].mxu0 %vm1161_vm15, %v3339_v26  ;;  %vm637_vm4 = vcmp.lt.s32.totalorder %v509_v18, 1000  ;;  %v494_v35 = vadd.s32 %v3442_v31, %v364_v20  ;;  %vm1170_vm6 = vcmp.eq.s32.totalorder %v3565_v16, %v3677_v7  ;;  %v268_v5 = vld [vmem:[%s3384_s29 + $0x350] sm:$0xff]  ;;  %v269_v6 = vld [vmem:[%s3384_s29 + $0x358] sm:$0xff] }
  0x6d   :  { %vm638_vm5 = vcmp.lt.s32.totalorder %v510_v19, 1000  ;;  %2507 = vmatmul.mubr.msk.f32.gmra.mrb[16].mxu1 %vm1163_vm0, %v3339_v26  ;;  %vm621_vm8 = vcmp.lt.s32.totalorder %v493_v25, 1000  ;;  %v541_v36 = vadd.s32 %v3442_v31, %v411_v27  ;;  %v542_v37 = vadd.s32 %v3442_v31, %v412_v28  ;;  %2444 = vmatprep.mubr.msk.f32.mxu0 %vm1170_vm6, %v3339_v26  ;;  %v254_v25 = vld [vmem:[%s3384_s29 + $0x2e0] sm:$0xff]  ;;  %v255_v27 = vld [vmem:[%s3384_s29 + $0x2e8] sm:$0xff] }
  0x6e   :  { %vm3173_vm7 = vmpackc.low %vm638_vm5, %vm637_vm4  ;;  %vm1172_vm9 = vcmp.eq.s32.totalorder %v3565_v16, %v3682_v13  ;;  %vm622_vm10 = vcmp.lt.s32.totalorder %v494_v35, 1000  ;;  %v395_v38 = vadd.s32 832, %v3402_v8  ;;  %v396_v39 = vadd.s32 840, %v3402_v8 }
  0x6f   :  { %3174 = vmatprep.subr.msk.bf16.mxu0 %vm3173_vm7, %v3172_v9  ;;  %2508 = vmatprep.mubr.msk.f32.mxu1 %vm1172_vm9, %v3339_v26  ;;  %v3223_v40 = vpack.c.bf16 %v267_v32, %v266_v30  ;;  %vm3176_vm11 = vmpackc.low %vm622_vm10, %vm621_vm8  ;;  %vm669_vm12 = vcmp.lt.s32.totalorder %v541_v36, 1000  ;;  %vm670_vm13 = vcmp.lt.s32.totalorder %v542_v37, 1000  ;;  %vm1169_vm14 = vcmp.eq.s32.totalorder %v3565_v16, %v3691_v22  ;;  %v238_v30 = vld [vmem:[%s3384_s29 + $0x260] sm:$0xff]  ;;  %v239_v32 = vld [vmem:[%s3384_s29 + $0x268] sm:$0xff] }
  0x70   :  { %vm1171_vm15 = vcmp.eq.s32.totalorder %v3565_v16, %v3694_v24  ;;  %3177 = vmatpush3.bf16.msk.msra.mxu0 %vm3176_vm11, %v3175_v21  ;;  %vm3221_vm0 = vmpackc.low %vm670_vm13, %vm669_vm12  ;;  %v525_v44 = vadd.s32 %v3442_v31, %v395_v38  ;;  %v526_v47 = vadd.s32 %v3442_v31, %v396_v39  ;;  %vm1178_vm1 = vcmp.eq.s32.totalorder %v3589_v45, %v3677_v7  ;;  %v286_v37 = vld [vmem:[%s3384_s29 + $0x3e0] sm:$0xff]  ;;  %v287_v38 = vld [vmem:[%s3384_s29 + $0x3e8] sm:$0xff] }
  0x71   :  { %vm1180_vm2 = vcmp.eq.s32.totalorder %v3589_v45, %v3682_v13  ;;  %3222 = vmatprep.subr.msk.bf16.mxu1 %vm3221_vm0, %v3220_v29  ;;  %2445 = vmatmul.mubr.msk.f32.gmra.mrb[18].mxu0 %vm1169_vm14, %v3339_v26  ;;  %vm1177_vm3 = vcmp.eq.s32.totalorder %v3589_v45, %v3691_v22  ;;  %vm1179_vm4 = vcmp.eq.s32.totalorder %v3589_v45, %v3694_v24  ;;  %v381_v51 = vadd.s32 720, %v3402_v8 }
  0x72   :  { %v382_v54 = vadd.s32 728, %v3402_v8  ;;  %vm653_vm5 = vcmp.lt.s32.totalorder %v525_v44, 1000  ;;  %vm654_vm6 = vcmp.lt.s32.totalorder %v526_v47, 1000  ;;  %2509 = vmatmul.mubr.msk.f32.gmra.mrb[18].mxu1 %vm1171_vm15, %v3339_v26  ;;  %2446 = vmatprep.mubr.msk.f32.mxu0 %vm1178_vm1, %v3339_v26  ;;  %v3178_v57 = vpack.c.bf16 %v253_v42, %v252_v41 }
  0x73   :  { %v365_v58 = vadd.s32 592, %v3402_v8  ;;  %vm3224_vm7 = vmpackc.low %vm654_vm6, %vm653_vm5  ;;  %2510 = vmatprep.mubr.msk.f32.mxu1 %vm1180_vm2, %v3339_v26  ;;  %v511_v59 = vadd.s32 %v3442_v31, %v381_v51  ;;  %v366_v61 = vadd.s32 600, %v3402_v8  ;;  %v3181_v63 = vpack.c.bf16 %v237_v50, %v236_v49 }
  0x74   :  { %v512_v60 = vadd.s32 %v3442_v31, %v382_v54  ;;  %3225 = vmatpush3.bf16.msk.msra.mxu1 %vm3224_vm7, %v3223_v40  ;;  %v413_v1 = vadd.s32 976, %v3402_v8  ;;  %v414_v2 = vadd.s32 984, %v3402_v8  ;;  %v3226_v4 = vpack.c.bf16 %v285_v56, %v284_v55  ;;  %v270_v55 = vld [vmem:[%s3384_s29 + $0x360] sm:$0xff]  ;;  %v271_v56 = vld [vmem:[%s3384_s29 + $0x368] sm:$0xff] }
  0x75   :  { %v495_v0 = vadd.s32 %v3442_v31, %v365_v58  ;;  %2447 = vmatmul.mubr.msk.f32.gmra.mrb[20].mxu0 %vm1177_vm3, %v3339_v26  ;;  %vm639_vm8 = vcmp.lt.s32.totalorder %v511_v59, 1000  ;;  %v496_v9 = vadd.s32 %v3442_v31, %v366_v61  ;;  %vm1186_vm10 = vcmp.eq.s32.totalorder %v3592_v46, %v3677_v7 }
  0x76   :  { %vm640_vm9 = vcmp.lt.s32.totalorder %v512_v60, 1000  ;;  %2511 = vmatmul.mubr.msk.f32.gmra.mrb[20].mxu1 %vm1179_vm4, %v3339_v26  ;;  %v543_v10 = vadd.s32 %v3442_v31, %v413_v1  ;;  %v544_v18 = vadd.s32 %v3442_v31, %v414_v2  ;;  %2448 = vmatprep.mubr.msk.f32.mxu0 %vm1186_vm10, %v3339_v26  ;;  %vm1188_vm13 = vcmp.eq.s32.totalorder %v3592_v46, %v3682_v13  ;;  %v257_v1 = vld [vmem:[%s3384_s29 + $0x2f8] sm:$0xff] }
  0x77   :  { %vm3179_vm11 = vmpackc.low %vm640_vm9, %vm639_vm8  ;;  %vm623_vm12 = vcmp.lt.s32.totalorder %v495_v0, 1000  ;;  %vm624_vm14 = vcmp.lt.s32.totalorder %v496_v9, 1000  ;;  %2512 = vmatprep.mubr.msk.f32.mxu1 %vm1188_vm13, %v3339_v26  ;;  %v397_v19 = vadd.s32 848, %v3402_v8  ;;  %v398_v20 = vadd.s32 856, %v3402_v8  ;;  %v256_v0 = vld [vmem:[%s3384_s29 + $0x2f0] sm:$0xff] }
  0x78   :  { %3180 = vmatprep.subr.msk.bf16.mxu0 %vm3179_vm11, %v3178_v57  ;;  %v3229_v21 = vpack.c.bf16 %v269_v6, %v268_v5  ;;  %vm3182_vm15 = vmpackc.low %vm624_vm14, %vm623_vm12  ;;  %vm671_vm0 = vcmp.lt.s32.totalorder %v543_v10, 1000  ;;  %vm672_vm1 = vcmp.lt.s32.totalorder %v544_v18, 1000  ;;  %vm1185_vm2 = vcmp.eq.s32.totalorder %v3592_v46, %v3691_v22  ;;  %v240_v5 = vld [vmem:[%s3384_s29 + $0x270] sm:$0xff]  ;;  %v241_v6 = vld [vmem:[%s3384_s29 + $0x278] sm:$0xff] }
  0x79   :  { %vm1187_vm3 = vcmp.eq.s32.totalorder %v3592_v46, %v3694_v24  ;;  %3183 = vmatpush3.bf16.msk.msra.mxu0 %vm3182_vm15, %v3181_v63  ;;  %vm3227_vm4 = vmpackc.low %vm672_vm1, %vm671_vm0  ;;  %v527_v28 = vadd.s32 %v3442_v31, %v397_v19  ;;  %v528_v29 = vadd.s32 %v3442_v31, %v398_v20  ;;  %vm1194_vm5 = vcmp.eq.s32.totalorder %v3619_v15, %v3677_v7  ;;  %v288_v18 = vld [vmem:[%s3384_s29 + $0x3f0] sm:$0xff]  ;;  %v289_v19 = vld [vmem:[%s3384_s29 + $0x3f8] sm:$0xff] }
  0x7a   :  { %vm1196_vm6 = vcmp.eq.s32.totalorder %v3619_v15, %v3682_v13  ;;  %3228 = vmatprep.subr.msk.bf16.mxu1 %vm3227_vm4, %v3226_v4  ;;  %2449 = vmatmul.mubr.msk.f32.gmra.mrb[22].mxu0 %vm1185_vm2, %v3339_v26  ;;  %vm1193_vm7 = vcmp.eq.s32.totalorder %v3619_v15, %v3691_v22  ;;  %vm1195_vm8 = vcmp.eq.s32.totalorder %v3619_v15, %v3694_v24  ;;  %v383_v35 = vadd.s32 736, %v3402_v8 }
  0x7b   :  { %v384_v36 = vadd.s32 744, %v3402_v8  ;;  %vm655_vm9 = vcmp.lt.s32.totalorder %v527_v28, 1000  ;;  %vm656_vm10 = vcmp.lt.s32.totalorder %v528_v29, 1000  ;;  %2513 = vmatmul.mubr.msk.f32.gmra.mrb[22].mxu1 %vm1187_vm3, %v3339_v26  ;;  %2450 = vmatprep.mubr.msk.f32.mxu0 %vm1194_vm5, %v3339_v26  ;;  %v3184_v39 = vpack.c.bf16 %v255_v27, %v254_v25 }
  0x7c   :  { %v367_v40 = vadd.s32 608, %v3402_v8  ;;  %vm3230_vm11 = vmpackc.low %vm656_vm10, %vm655_vm9  ;;  %2514 = vmatprep.mubr.msk.f32.mxu1 %vm1196_vm6, %v3339_v26  ;;  %v513_v41 = vadd.s32 %v3442_v31, %v383_v35  ;;  %v368_v44 = vadd.s32 616, %v3402_v8  ;;  %v3187_v47 = vpack.c.bf16 %v239_v32, %v238_v30 }
  0x7d   :  { %v514_v42 = vadd.s32 %v3442_v31, %v384_v36  ;;  %3231 = vmatpush3.bf16.msk.msra.mxu1 %vm3230_vm11, %v3229_v21  ;;  %v415_v50 = vadd.s32 992, %v3402_v8  ;;  %v416_v51 = vadd.s32 1000, %v3402_v8  ;;  %v3232_v54 = vpack.c.bf16 %v287_v38, %v286_v37  ;;  %v272_v37 = vld [vmem:[%s3384_s29 + $0x370] sm:$0xff]  ;;  %v273_v38 = vld [vmem:[%s3384_s29 + $0x378] sm:$0xff] }
  0x7e   :  { %v497_v49 = vadd.s32 %v3442_v31, %v367_v40  ;;  %2451 = vmatmul.mubr.msk.f32.gmra.mrb[24].mxu0 %vm1193_vm7, %v3339_v26  ;;  %vm641_vm12 = vcmp.lt.s32.totalorder %v513_v41, 1000  ;;  %v498_v57 = vadd.s32 %v3442_v31, %v368_v44  ;;  %vm1202_vm14 = vcmp.eq.s32.totalorder %v3622_v17, %v3677_v7 }
  0x7f   :  { %vm642_vm13 = vcmp.lt.s32.totalorder %v514_v42, 1000  ;;  %2515 = vmatmul.mubr.msk.f32.gmra.mrb[24].mxu1 %vm1195_vm8, %v3339_v26  ;;  %v545_v58 = vadd.s32 %v3442_v31, %v415_v50  ;;  %v546_v59 = vadd.s32 %v3442_v31, %v416_v51  ;;  %2452 = vmatprep.mubr.msk.f32.mxu0 %vm1202_vm14, %v3339_v26  ;;  %vm1204_vm1 = vcmp.eq.s32.totalorder %v3622_v17, %v3682_v13 }
  0x80   :  { %vm3185_vm15 = vmpackc.low %vm642_vm13, %vm641_vm12  ;;  %vm625_vm0 = vcmp.lt.s32.totalorder %v497_v49, 1000  ;;  %vm626_vm2 = vcmp.lt.s32.totalorder %v498_v57, 1000  ;;  %2516 = vmatprep.mubr.msk.f32.mxu1 %vm1204_vm1, %v3339_v26  ;;  %v399_v60 = vadd.s32 864, %v3402_v8  ;;  %v400_v61 = vadd.s32 872, %v3402_v8 }
  0x81   :  { %3186 = vmatprep.subr.msk.bf16.mxu0 %vm3185_vm15, %v3184_v39  ;;  %v3235_v63 = vpack.c.bf16 %v271_v56, %v270_v55  ;;  %vm3188_vm3 = vmpackc.low %vm626_vm2, %vm625_vm0  ;;  %vm673_vm4 = vcmp.lt.s32.totalorder %v545_v58, 1000  ;;  %vm674_vm5 = vcmp.lt.s32.totalorder %v546_v59, 1000  ;;  %vm1201_vm6 = vcmp.eq.s32.totalorder %v3622_v17, %v3691_v22 }
  0x82   :  { %vm1203_vm7 = vcmp.eq.s32.totalorder %v3622_v17, %v3694_v24  ;;  %3189 = vmatpush3.bf16.msk.msra.mxu0 %vm3188_vm3, %v3187_v47  ;;  %vm3233_vm8 = vmpackc.low %vm674_vm5, %vm673_vm4  ;;  %v529_v2 = vadd.s32 %v3442_v31, %v399_v60  ;;  %v530_v4 = vadd.s32 %v3442_v31, %v400_v61  ;;  %vm1210_vm9 = vcmp.eq.s32.totalorder %v3649_v52, %v3677_v7 }
  0x83   :  { %vm1212_vm10 = vcmp.eq.s32.totalorder %v3649_v52, %v3682_v13  ;;  %3234 = vmatprep.subr.msk.bf16.mxu1 %vm3233_vm8, %v3232_v54  ;;  %2453 = vmatmul.mubr.msk.f32.gmra.mrb[26].mxu0 %vm1201_vm6, %v3339_v26  ;;  %vm1209_vm11 = vcmp.eq.s32.totalorder %v3649_v52, %v3691_v22  ;;  %vm1211_vm12 = vcmp.eq.s32.totalorder %v3649_v52, %v3694_v24  ;;  %v385_v9 = vadd.s32 752, %v3402_v8 }
  0x84   :  { %v386_v10 = vadd.s32 760, %v3402_v8  ;;  %vm657_vm13 = vcmp.lt.s32.totalorder %v529_v2, 1000  ;;  %vm658_vm14 = vcmp.lt.s32.totalorder %v530_v4, 1000  ;;  %2517 = vmatmul.mubr.msk.f32.gmra.mrb[26].mxu1 %vm1203_vm7, %v3339_v26  ;;  %2454 = vmatprep.mubr.msk.f32.mxu0 %vm1210_vm9, %v3339_v26  ;;  %v3190_v20 = vpack.c.bf16 %v257_v1, %v256_v0 }
  0x85   :  { %v369_v21 = vadd.s32 624, %v3402_v8  ;;  %vm3236_vm15 = vmpackc.low %vm658_vm14, %vm657_vm13  ;;  %2518 = vmatprep.mubr.msk.f32.mxu1 %vm1212_vm10, %v3339_v26  ;;  %v515_v25 = vadd.s32 %v3442_v31, %v385_v9  ;;  %v370_v28 = vadd.s32 632, %v3402_v8  ;;  %v3193_v29 = vpack.c.bf16 %v241_v6, %v240_v5 }
  0x86   :  { %v516_v27 = vadd.s32 %v3442_v31, %v386_v10  ;;  %3237 = vmatpush3.bf16.msk.msra.mxu1 %vm3236_vm15, %v3235_v63  ;;  %v417_v32 = vadd.s32 1008, %v3402_v8  ;;  %v418_v35 = vadd.s32 1016, %v3402_v8  ;;  %v3238_v36 = vpack.c.bf16 %v289_v19, %v288_v18 }
  0x87   :  { %v499_v30 = vadd.s32 %v3442_v31, %v369_v21  ;;  %2455 = vmatmul.mubr.msk.f32.gmra.mrb[28].mxu0 %vm1209_vm11, %v3339_v26  ;;  %vm643_vm0 = vcmp.lt.s32.totalorder %v515_v25, 1000  ;;  %v500_v39 = vadd.s32 %v3442_v31, %v370_v28  ;;  %vm1218_vm2 = vcmp.eq.s32.totalorder %v3652_v53, %v3677_v7 }
  0x88   :  { %vm644_vm1 = vcmp.lt.s32.totalorder %v516_v27, 1000  ;;  %2519 = vmatmul.mubr.msk.f32.gmra.mrb[28].mxu1 %vm1211_vm12, %v3339_v26  ;;  %v547_v40 = vadd.s32 %v3442_v31, %v417_v32  ;;  %v548_v41 = vadd.s32 %v3442_v31, %v418_v35  ;;  %2456 = vmatprep.mubr.msk.f32.mxu0 %vm1218_vm2, %v3339_v26  ;;  %vm1220_vm5 = vcmp.eq.s32.totalorder %v3652_v53, %v3682_v13 }
  0x89   :  { %vm3191_vm3 = vmpackc.low %vm644_vm1, %vm643_vm0  ;;  %vm627_vm4 = vcmp.lt.s32.totalorder %v499_v30, 1000  ;;  %vm628_vm6 = vcmp.lt.s32.totalorder %v500_v39, 1000  ;;  %2520 = vmatprep.mubr.msk.f32.mxu1 %vm1220_vm5, %v3339_v26  ;;  %v401_v7 = vadd.s32 880, %v3402_v8  ;;  %v402_v42 = vadd.s32 888, %v3402_v8 }
  0x8a   :  { %3192 = vmatprep.subr.msk.bf16.mxu0 %vm3191_vm3, %v3190_v20  ;;  %v3241_v44 = vpack.c.bf16 %v273_v38, %v272_v37  ;;  %vm3194_vm7 = vmpackc.low %vm628_vm6, %vm627_vm4  ;;  %vm675_vm8 = vcmp.lt.s32.totalorder %v547_v40, 1000  ;;  %vm676_vm9 = vcmp.lt.s32.totalorder %v548_v41, 1000  ;;  %vm1217_vm10 = vcmp.eq.s32.totalorder %v3652_v53, %v3691_v22 }
  0x8b   :  { %vm1219_vm11 = vcmp.eq.s32.totalorder %v3652_v53, %v3694_v24  ;;  %3195 = vmatpush3.bf16.msk.msra.mxu0 %vm3194_vm7, %v3193_v29  ;;  %vm3239_vm12 = vmpackc.low %vm676_vm9, %vm675_vm8  ;;  %v531_v13 = vadd.s32 %v3442_v31, %v401_v7  ;;  %v532_v47 = vadd.s32 %v3442_v31, %v402_v42  ;;  %v1087_v49 = vsub.s32 5, %v3402_v8 }
  0x8c   :  { %v1083_v50 = vsub.s32 4, %v3402_v8  ;;  %3240 = vmatprep.subr.msk.bf16.mxu1 %vm3239_vm12, %v3238_v36  ;;  %2457 = vmatmul.mubr.msk.f32.gmra.mrb[30].mxu0 %vm1217_vm10, %v3339_v26  ;;  %v1095_v51 = vsub.s32 7, %v3402_v8  ;;  %v1091_v22 = vsub.s32 6, %v3402_v8  ;;  %v2062_v9 = vand.u32 127, %v290_v3 }
  0x8d   :  { %vm659_vm13 = vcmp.lt.s32.totalorder %v531_v13, 1000  ;;  %vm660_vm14 = vcmp.lt.s32.totalorder %v532_v47, 1000  ;;  %2521 = vmatmul.mubr.msk.f32.gmra.mrb[30].mxu1 %vm1219_vm11, %v3339_v26  ;;  %v4146_v24 = vrot.slane %v3668_v62, %v1087_v49  ;;  %v3340_v25 = vmov 0.0  }
  0x8e   :  { %v4149_v31 = vrot.slane %v3668_v62, %v1083_v50  ;;  %vm3242_vm15 = vmpackc.low %vm660_vm14, %vm659_vm13  ;;  %v4152_v54 = vrot.slane %v3668_v62, %v1095_v51  ;;  %v4155_v55 = vrot.slane %v3668_v62, %v1091_v22 }
  0x8f   :  { %3243 = vmatpush3.bf16.msk.msra.mxu1 %vm3242_vm15, %v3241_v44  ;;  %vm1102_vm0 = vcmp.eq.s32.totalorder %v3402_v8, %v4146_v24  ;;  %vm1110_vm2 = vcmp.eq.s32.totalorder %v3431_v23, %v4146_v24  ;;  %vm1118_vm8 = vcmp.eq.s32.totalorder %v3447_v33, %v4146_v24  ;;  %vm1126_vm12 = vcmp.eq.s32.totalorder %v3450_v34, %v4146_v24 }
  0x90   :  { %vm1101_vm1 = vcmp.eq.s32.totalorder %v3402_v8, %v4149_v31  ;;  %2554 = vmatprep.mubr.msk.f32.mxu0 %vm1102_vm0, %v3339_v26  ;;  %vm1104_vm3 = vcmp.eq.s32.totalorder %v3402_v8, %v4152_v54  ;;  %vm1103_vm4 = vcmp.eq.s32.totalorder %v3402_v8, %v4155_v55  ;;  %vm1112_vm5 = vcmp.eq.s32.totalorder %v3431_v23, %v4152_v54 }
  0x91   :  { %2555 = vmatmul.mubr.msk.f32.vlgmr.msra.gmra.mrb[32].mxu0 %vm1101_vm1, %v3339_v26  ;;  %2618 = vmatprep.mubr.msk.f32.mxu1 %vm1104_vm3, %v3339_v26  ;;  %vm1109_vm6 = vcmp.eq.s32.totalorder %v3431_v23, %v4149_v31  ;;  %vm1111_vm7 = vcmp.eq.s32.totalorder %v3431_v23, %v4155_v55  ;;  %vm1120_vm9 = vcmp.eq.s32.totalorder %v3447_v33, %v4152_v54 }
  0x92   :  { %2619 = vmatmul.mubr.msk.f32.vlgmr.msra.gmra.mrb[32].mxu1 %vm1103_vm4, %v3339_v26  ;;  %2556 = vmatprep.mubr.msk.f32.mxu0 %vm1110_vm2, %v3339_v26  ;;  %vm1117_vm10 = vcmp.eq.s32.totalorder %v3447_v33, %v4149_v31  ;;  %vm1119_vm11 = vcmp.eq.s32.totalorder %v3447_v33, %v4155_v55  ;;  %vm1128_vm13 = vcmp.eq.s32.totalorder %v3450_v34, %v4152_v54 }
  0x93   :  { %2620 = vmatprep.mubr.msk.f32.mxu1 %vm1112_vm5, %v3339_v26  ;;  %vm1125_vm14 = vcmp.eq.s32.totalorder %v3450_v34, %v4149_v31  ;;  %vm1127_vm15 = vcmp.eq.s32.totalorder %v3450_v34, %v4155_v55  ;;  %vm1134_vm0 = vcmp.eq.s32.totalorder %v3496_v11, %v4146_v24  ;;  %vm1136_vm1 = vcmp.eq.s32.totalorder %v3496_v11, %v4152_v54 }
  0x94   :  { %vm1133_vm2 = vcmp.eq.s32.totalorder %v3496_v11, %v4149_v31  ;;  %vm1135_vm3 = vcmp.eq.s32.totalorder %v3496_v11, %v4155_v55  ;;  %vm1142_vm4 = vcmp.eq.s32.totalorder %v3501_v14, %v4146_v24  ;;  %vm1144_vm5 = vcmp.eq.s32.totalorder %v3501_v14, %v4152_v54 }
  0x95   :  { %2557 = vmatmul.mubr.msk.f32.gmra.mrb[34].mxu0 %vm1109_vm6, %v3339_v26  ;;  %vm1141_vm6 = vcmp.eq.s32.totalorder %v3501_v14, %v4149_v31 }
  0x96   :  { %2621 = vmatmul.mubr.msk.f32.gmra.mrb[34].mxu1 %vm1111_vm7, %v3339_v26  ;;  %2558 = vmatprep.mubr.msk.f32.mxu0 %vm1118_vm8, %v3339_v26  ;;  %vm1143_vm7 = vcmp.eq.s32.totalorder %v3501_v14, %v4155_v55  ;;  %vm1150_vm8 = vcmp.eq.s32.totalorder %v3527_v43, %v4146_v24 }
  0x97   :  { %2622 = vmatprep.mubr.msk.f32.mxu1 %vm1120_vm9, %v3339_v26  ;;  %vm1152_vm9 = vcmp.eq.s32.totalorder %v3527_v43, %v4152_v54 }
  0x99   :  { %2559 = vmatmul.mubr.msk.f32.gmra.mrb[36].mxu0 %vm1117_vm10, %v3339_v26  ;;  %vm1149_vm10 = vcmp.eq.s32.totalorder %v3527_v43, %v4149_v31 }
  0x9a   :  { %2623 = vmatmul.mubr.msk.f32.gmra.mrb[36].mxu1 %vm1119_vm11, %v3339_v26  ;;  %2560 = vmatprep.mubr.msk.f32.mxu0 %vm1126_vm12, %v3339_v26  ;;  %vm1151_vm11 = vcmp.eq.s32.totalorder %v3527_v43, %v4155_v55  ;;  %vm1158_vm12 = vcmp.eq.s32.totalorder %v3534_v48, %v4146_v24 }
  0x9b   :  { %2624 = vmatprep.mubr.msk.f32.mxu1 %vm1128_vm13, %v3339_v26  ;;  %vm1160_vm13 = vcmp.eq.s32.totalorder %v3534_v48, %v4152_v54 }
  0x9d   :  { %2561 = vmatmul.mubr.msk.f32.gmra.mrb[38].mxu0 %vm1125_vm14, %v3339_v26  ;;  %vm1157_vm14 = vcmp.eq.s32.totalorder %v3534_v48, %v4149_v31 }
  0x9e   :  { %2625 = vmatmul.mubr.msk.f32.gmra.mrb[38].mxu1 %vm1127_vm15, %v3339_v26  ;;  %2562 = vmatprep.mubr.msk.f32.mxu0 %vm1134_vm0, %v3339_v26  ;;  %vm1159_vm15 = vcmp.eq.s32.totalorder %v3534_v48, %v4155_v55  ;;  %vm1166_vm0 = vcmp.eq.s32.totalorder %v3560_v12, %v4146_v24 }
  0x9f   :  { %2626 = vmatprep.mubr.msk.f32.mxu1 %vm1136_vm1, %v3339_v26  ;;  %vm1168_vm1 = vcmp.eq.s32.totalorder %v3560_v12, %v4152_v54 }
  0xa1   :  { %2563 = vmatmul.mubr.msk.f32.gmra.mrb[40].mxu0 %vm1133_vm2, %v3339_v26  ;;  %vm1165_vm2 = vcmp.eq.s32.totalorder %v3560_v12, %v4149_v31 }
  0xa2   :  { %2627 = vmatmul.mubr.msk.f32.gmra.mrb[40].mxu1 %vm1135_vm3, %v3339_v26  ;;  %2564 = vmatprep.mubr.msk.f32.mxu0 %vm1142_vm4, %v3339_v26  ;;  %vm1167_vm3 = vcmp.eq.s32.totalorder %v3560_v12, %v4155_v55  ;;  %vm1174_vm4 = vcmp.eq.s32.totalorder %v3565_v16, %v4146_v24 }
  0xa3   :  { %2628 = vmatprep.mubr.msk.f32.mxu1 %vm1144_vm5, %v3339_v26  ;;  %vm1176_vm5 = vcmp.eq.s32.totalorder %v3565_v16, %v4152_v54 }
  0xa5   :  { %2565 = vmatmul.mubr.msk.f32.gmra.mrb[42].mxu0 %vm1141_vm6, %v3339_v26  ;;  %vm1173_vm6 = vcmp.eq.s32.totalorder %v3565_v16, %v4149_v31 }
  0xa6   :  { %2629 = vmatmul.mubr.msk.f32.gmra.mrb[42].mxu1 %vm1143_vm7, %v3339_v26  ;;  %2566 = vmatprep.mubr.msk.f32.mxu0 %vm1150_vm8, %v3339_v26  ;;  %vm1175_vm7 = vcmp.eq.s32.totalorder %v3565_v16, %v4155_v55  ;;  %vm1182_vm8 = vcmp.eq.s32.totalorder %v3589_v45, %v4146_v24 }
  0xa7   :  { %2630 = vmatprep.mubr.msk.f32.mxu1 %vm1152_vm9, %v3339_v26  ;;  %vm1184_vm9 = vcmp.eq.s32.totalorder %v3589_v45, %v4152_v54 }
  0xa9   :  { %2567 = vmatmul.mubr.msk.f32.gmra.mrb[44].mxu0 %vm1149_vm10, %v3339_v26  ;;  %vm1181_vm10 = vcmp.eq.s32.totalorder %v3589_v45, %v4149_v31 }
  0xaa   :  { %2631 = vmatmul.mubr.msk.f32.gmra.mrb[44].mxu1 %vm1151_vm11, %v3339_v26  ;;  %2568 = vmatprep.mubr.msk.f32.mxu0 %vm1158_vm12, %v3339_v26  ;;  %vm1183_vm11 = vcmp.eq.s32.totalorder %v3589_v45, %v4155_v55  ;;  %vm1190_vm12 = vcmp.eq.s32.totalorder %v3592_v46, %v4146_v24 }
  0xab   :  { %2632 = vmatprep.mubr.msk.f32.mxu1 %vm1160_vm13, %v3339_v26  ;;  %vm1192_vm13 = vcmp.eq.s32.totalorder %v3592_v46, %v4152_v54 }
  0xad   :  { %2569 = vmatmul.mubr.msk.f32.gmra.mrb[46].mxu0 %vm1157_vm14, %v3339_v26  ;;  %vm1189_vm14 = vcmp.eq.s32.totalorder %v3592_v46, %v4149_v31 }
  0xae   :  { %2633 = vmatmul.mubr.msk.f32.gmra.mrb[46].mxu1 %vm1159_vm15, %v3339_v26  ;;  %2570 = vmatprep.mubr.msk.f32.mxu0 %vm1166_vm0, %v3339_v26  ;;  %vm1191_vm15 = vcmp.eq.s32.totalorder %v3592_v46, %v4155_v55  ;;  %vm1198_vm0 = vcmp.eq.s32.totalorder %v3619_v15, %v4146_v24 }
  0xaf   :  { %2634 = vmatprep.mubr.msk.f32.mxu1 %vm1168_vm1, %v3339_v26  ;;  %vm1200_vm1 = vcmp.eq.s32.totalorder %v3619_v15, %v4152_v54 }
  0xb1   :  { %2571 = vmatmul.mubr.msk.f32.gmra.mrb[48].mxu0 %vm1165_vm2, %v3339_v26  ;;  %vm1197_vm2 = vcmp.eq.s32.totalorder %v3619_v15, %v4149_v31 }
  0xb2   :  { %2635 = vmatmul.mubr.msk.f32.gmra.mrb[48].mxu1 %vm1167_vm3, %v3339_v26  ;;  %2572 = vmatprep.mubr.msk.f32.mxu0 %vm1174_vm4, %v3339_v26  ;;  %vm1199_vm3 = vcmp.eq.s32.totalorder %v3619_v15, %v4155_v55  ;;  %vm1206_vm4 = vcmp.eq.s32.totalorder %v3622_v17, %v4146_v24 }
  0xb3   :  { %2636 = vmatprep.mubr.msk.f32.mxu1 %vm1176_vm5, %v3339_v26  ;;  %vm1208_vm5 = vcmp.eq.s32.totalorder %v3622_v17, %v4152_v54 }
  0xb5   :  { %2573 = vmatmul.mubr.msk.f32.gmra.mrb[50].mxu0 %vm1173_vm6, %v3339_v26  ;;  %vm1205_vm6 = vcmp.eq.s32.totalorder %v3622_v17, %v4149_v31 }
  0xb6   :  { %2637 = vmatmul.mubr.msk.f32.gmra.mrb[50].mxu1 %vm1175_vm7, %v3339_v26  ;;  %2574 = vmatprep.mubr.msk.f32.mxu0 %vm1182_vm8, %v3339_v26  ;;  %vm1207_vm7 = vcmp.eq.s32.totalorder %v3622_v17, %v4155_v55  ;;  %vm1214_vm8 = vcmp.eq.s32.totalorder %v3649_v52, %v4146_v24 }
  0xb7   :  { %2638 = vmatprep.mubr.msk.f32.mxu1 %vm1184_vm9, %v3339_v26  ;;  %vm1216_vm9 = vcmp.eq.s32.totalorder %v3649_v52, %v4152_v54 }
  0xb9   :  { %2575 = vmatmul.mubr.msk.f32.gmra.mrb[52].mxu0 %vm1181_vm10, %v3339_v26  ;;  %vm1213_vm10 = vcmp.eq.s32.totalorder %v3649_v52, %v4149_v31 }
  0xba   :  { %2639 = vmatmul.mubr.msk.f32.gmra.mrb[52].mxu1 %vm1183_vm11, %v3339_v26  ;;  %2576 = vmatprep.mubr.msk.f32.mxu0 %vm1190_vm12, %v3339_v26  ;;  %vm1215_vm11 = vcmp.eq.s32.totalorder %v3649_v52, %v4155_v55  ;;  %vm1222_vm12 = vcmp.eq.s32.totalorder %v3652_v53, %v4146_v24 }
  0xbb   :  { %2640 = vmatprep.mubr.msk.f32.mxu1 %vm1192_vm13, %v3339_v26  ;;  %vm1224_vm13 = vcmp.eq.s32.totalorder %v3652_v53, %v4152_v54 }
  0xbd   :  { %2577 = vmatmul.mubr.msk.f32.gmra.mrb[54].mxu0 %vm1189_vm14, %v3339_v26  ;;  %vm1221_vm14 = vcmp.eq.s32.totalorder %v3652_v53, %v4149_v31 }
  0xbe   :  { %2641 = vmatmul.mubr.msk.f32.gmra.mrb[54].mxu1 %vm1191_vm15, %v3339_v26  ;;  %2578 = vmatprep.mubr.msk.f32.mxu0 %vm1198_vm0, %v3339_v26  ;;  %vm1223_vm15 = vcmp.eq.s32.totalorder %v3652_v53, %v4155_v55  ;;  %vm2063_vm0 = vcmp.eq.s32.totalorder %v3402_v8, %v2062_v9 }
  0xbf   :  { %2642 = vmatprep.mubr.msk.f32.mxu1 %vm1200_vm1, %v3339_v26  ;;  %vm2065_vm1 = vcmp.eq.s32.totalorder %v3447_v33, %v2062_v9  ;;  %v2650_v27 = vsel %vm2063_vm0, 1.0, %v3340_v25 }
  0xc0   :  { %v2652_v28 = vsel %vm2065_vm1, 1.0, %v3340_v25 }
  0xc1   :  { %2579 = vmatmul.mubr.msk.f32.gmra.mrb[56].mxu0 %vm1197_vm2, %v3339_v26  ;;  %vm2064_vm2 = vcmp.eq.s32.totalorder %v3431_v23, %v2062_v9 }
  0xc2   :  { %2643 = vmatmul.mubr.msk.f32.gmra.mrb[56].mxu1 %vm1199_vm3, %v3339_v26  ;;  %2580 = vmatprep.mubr.msk.f32.mxu0 %vm1206_vm4, %v3339_v26  ;;  %vm2075_vm3 = vcmask 261120   ;;  %v4361_v29 = vsel %vm2064_vm2, 1.0, %v3340_v25  ;;  %vm2066_vm4 = vcmp.eq.s32.totalorder %v3450_v34, %v2062_v9 }
  0xc3   :  { %2644 = vmatprep.mubr.msk.f32.mxu1 %vm1208_vm5, %v3339_v26  ;;  %v4368_v33 = vsel %vm2066_vm4, 1.0, %v3340_v25  ;;  %vm4396_vm5 = vmpackc.low %vm2075_vm3, %vm2075_vm3 }
  0xc5   :  { %2581 = vmatmul.mubr.msk.f32.gmra.mrb[58].mxu0 %vm1205_vm6, %v3339_v26 }
  0xc6   :  { %2645 = vmatmul.mubr.msk.f32.gmra.mrb[58].mxu1 %vm1207_vm7, %v3339_v26  ;;  %2582 = vmatprep.mubr.msk.f32.mxu0 %vm1214_vm8, %v3339_v26 }
  0xc7   :  { %2646 = vmatprep.mubr.msk.f32.mxu1 %vm1216_vm9, %v3339_v26 }
  0xc9   :  { %2583 = vmatmul.mubr.msk.f32.gmra.mrb[60].mxu0 %vm1213_vm10, %v3339_v26 }
  0xca   :  { %2647 = vmatmul.mubr.msk.f32.gmra.mrb[60].mxu1 %vm1215_vm11, %v3339_v26  ;;  %2584 = vmatprep.mubr.msk.f32.mxu0 %vm1222_vm12, %v3339_v26 }
  0xcb   :  { %2648 = vmatprep.mubr.msk.f32.mxu1 %vm1224_vm13, %v3339_v26 }
  0xcd   :  { %2585 = vmatmul.mubr.msk.f32.gmra.mrb[62].mxu0 %vm1221_vm14, %v3339_v26 }
  0xce   :  { %2649 = vmatmul.mubr.msk.f32.gmra.mrb[62].mxu1 %vm1223_vm15, %v3339_v26  ;;  %3046 = vmatprep.mubr.msk.f32.mxu0 %vm2075_vm3, %v2650_v27 }
  0xcf   :  { %3049 = vmatprep.mubr.msk.f32.mxu1 %vm2075_vm3, %v2652_v28 }
 0x11a   :  { %v2706_v11 = vpop.f32.mrb[0].mxu0 }
 0x11b   :  { %v2786_v14 = vpop.f32.mrb[0].mxu1  ;;  %v2707_v43 = vpop.f32.mrb[1].mxu0 }
 0x11c   :  { %v2708_v48 = vadd.f32 %v2707_v43, %v2706_v11  ;;  %v2787_v12 = vpop.f32.mrb[1].mxu1 }
 0x11d   :  { %v2788_v16 = vadd.f32 %v2787_v12, %v2786_v14 }
 0x11f   :  { %v4349_v45 = vadd.f32 %v2788_v16, %v2708_v48 }
 0x120   :  { %v2789_v46 = vpop.f32.mrb[2].mxu1  ;;  %v2709_v15 = vpop.f32.mrb[2].mxu0 }
 0x121   :  { %v2790_v17 = vpop.f32.mrb[3].mxu1  ;;  %v2710_v52 = vpop.f32.mrb[3].mxu0 }
 0x122   :  { %v2791_v62 = vadd.f32 %v2790_v17, %v2789_v46  ;;  %v2711_v56 = vadd.f32 %v2710_v52, %v2709_v15 }
 0x124   :  { %v4351_v57 = vadd.f32 %v2791_v62, %v2711_v56  ;;  %v2712_v53 = vpop.f32.mrb[4].mxu0  ;;  %v2792_v58 = vpop.f32.mrb[4].mxu1 }
 0x125   :  { %v2713_v59 = vpop.f32.mrb[5].mxu0  ;;  %v2793_v26 = vpop.f32.mrb[5].mxu1 }
 0x126   :  { %v2714_v60 = vadd.f32 %v2713_v59, %v2712_v53  ;;  %v2794_v61 = vadd.f32 %v2793_v26, %v2792_v58 }
 0x128   :  { %v4353_v63 = vadd.f32 %v2794_v61, %v2714_v60 }
 0x129   :  { %v2795_v0 = vpop.f32.mrb[6].mxu1 }
 0x12a   :  { %v2715_v1 = vpop.f32.mrb[6].mxu0  ;;  %v2796_v2 = vpop.f32.mrb[7].mxu1 }
 0x12b   :  { %v2716_v4 = vpop.f32.mrb[7].mxu0  ;;  %v2797_v5 = vadd.f32 %v2796_v2, %v2795_v0 }
 0x12c   :  { %v2717_v6 = vadd.f32 %v2716_v4, %v2715_v1 }
 0x12e   :  { %v4356_v10 = vadd.f32 %v2797_v5, %v2717_v6  ;;  %v2718_v18 = vpop.f32.mrb[8].mxu0  ;;  %v2798_v19 = vpop.f32.mrb[8].mxu1 }
 0x12f   :  { %v2719_v20 = vpop.f32.mrb[9].mxu0  ;;  %v2799_v21 = vpop.f32.mrb[9].mxu1 }
 0x130   :  { %v2720_v30 = vadd.f32 %v2719_v20, %v2718_v18  ;;  %v2800_v3 = vadd.f32 %v2799_v21, %v2798_v19 }
 0x132   :  { %v4366_v8 = vadd.f32 %v2800_v3, %v2720_v30  ;;  %v2721_v23 = vpop.f32.mrb[10].mxu0 }
 0x133   :  { %v2801_v32 = vpop.f32.mrb[10].mxu1  ;;  %v2722_v35 = vpop.f32.mrb[11].mxu0 }
 0x134   :  { %v2723_v36 = vadd.f32 %v2722_v35, %v2721_v23  ;;  %v2802_v37 = vpop.f32.mrb[11].mxu1 }
 0x135   :  { %v2803_v38 = vadd.f32 %v2802_v37, %v2801_v32 }
 0x136   :  { %v2724_v39 = vpop.f32.mrb[12].mxu0 }
 0x137   :  { %v4370_v40 = vadd.f32 %v2803_v38, %v2723_v36  ;;  %v2804_v41 = vpop.f32.mrb[12].mxu1  ;;  %v2725_v7 = vpop.f32.mrb[13].mxu0 }
 0x138   :  { %v2726_v42 = vadd.f32 %v2725_v7, %v2724_v39  ;;  %v2805_v44 = vpop.f32.mrb[13].mxu1 }
 0x139   :  { %v2806_v13 = vadd.f32 %v2805_v44, %v2804_v41 }
 0x13b   :  { %v4372_v47 = vadd.f32 %v2806_v13, %v2726_v42  ;;  %v2727_v34 = vpop.f32.mrb[14].mxu0 }
 0x13c   :  { %v2807_v49 = vpop.f32.mrb[14].mxu1  ;;  %v2728_v50 = vpop.f32.mrb[15].mxu0 }
 0x13d   :  { %v2729_v51 = vadd.f32 %v2728_v50, %v2727_v34  ;;  %v2808_v22 = vpop.f32.mrb[15].mxu1 }
 0x13e   :  { %v2809_v24 = vadd.f32 %v2808_v22, %v2807_v49 }
 0x13f   :  { %v2730_v31 = vpop.f32.mrb[16].mxu0 }
 0x140   :  { %v4374_v54 = vadd.f32 %v2809_v24, %v2729_v51  ;;  %v2810_v55 = vpop.f32.mrb[16].mxu1  ;;  %v2731_v11 = vpop.f32.mrb[17].mxu0 }
 0x141   :  { %v2732_v14 = vadd.f32 %v2731_v11, %v2730_v31  ;;  %v2811_v43 = vpop.f32.mrb[17].mxu1 }
 0x142   :  { %v2812_v48 = vadd.f32 %v2811_v43, %v2810_v55 }
 0x144   :  { %v4376_v12 = vadd.f32 %v2812_v48, %v2732_v14  ;;  %v2733_v16 = vpop.f32.mrb[18].mxu0 }
 0x145   :  { %v2813_v46 = vpop.f32.mrb[18].mxu1  ;;  %v2734_v15 = vpop.f32.mrb[19].mxu0 }
 0x146   :  { %v2735_v17 = vadd.f32 %v2734_v15, %v2733_v16  ;;  %v2814_v52 = vpop.f32.mrb[19].mxu1 }
 0x147   :  { %v2815_v62 = vadd.f32 %v2814_v52, %v2813_v46 }
 0x148   :  { %v2736_v56 = vpop.f32.mrb[20].mxu0 }
 0x149   :  { %v4378_v53 = vadd.f32 %v2815_v62, %v2735_v17  ;;  %v2816_v58 = vpop.f32.mrb[20].mxu1  ;;  %v2737_v59 = vpop.f32.mrb[21].mxu0 }
 0x14a   :  { %v2738_v26 = vadd.f32 %v2737_v59, %v2736_v56  ;;  %v2817_v60 = vpop.f32.mrb[21].mxu1 }
 0x14b   :  { %v2818_v61 = vadd.f32 %v2817_v60, %v2816_v58 }
 0x14d   :  { %v4380_v0 = vadd.f32 %v2818_v61, %v2738_v26  ;;  %v2739_v1 = vpop.f32.mrb[22].mxu0 }
 0x14e   :  { %v2819_v2 = vpop.f32.mrb[22].mxu1  ;;  %v2740_v4 = vpop.f32.mrb[23].mxu0 }
 0x14f   :  { %v2741_v5 = vadd.f32 %v2740_v4, %v2739_v1  ;;  %v2820_v6 = vpop.f32.mrb[23].mxu1 }
 0x150   :  { %v2821_v9 = vadd.f32 %v2820_v6, %v2819_v2 }
 0x151   :  { %v2742_v18 = vpop.f32.mrb[24].mxu0 }
 0x152   :  { %v4382_v19 = vadd.f32 %v2821_v9, %v2741_v5  ;;  %v2822_v20 = vpop.f32.mrb[24].mxu1  ;;  %v2743_v21 = vpop.f32.mrb[25].mxu0 }
 0x153   :  { %v2744_v25 = vadd.f32 %v2743_v21, %v2742_v18  ;;  %v2823_v27 = vpop.f32.mrb[25].mxu1 }
 0x154   :  { %v2824_v28 = vadd.f32 %v2823_v27, %v2822_v20 }
 0x156   :  { %v4384_v30 = vadd.f32 %v2824_v28, %v2744_v25  ;;  %v2745_v3 = vpop.f32.mrb[26].mxu0 }
 0x157   :  { %v2825_v23 = vpop.f32.mrb[26].mxu1  ;;  %v2746_v32 = vpop.f32.mrb[27].mxu0 }
 0x158   :  { %v2747_v35 = vadd.f32 %v2746_v32, %v2745_v3  ;;  %v2826_v36 = vpop.f32.mrb[27].mxu1 }
 0x159   :  { %v2827_v37 = vadd.f32 %v2826_v36, %v2825_v23 }
 0x15a   :  { %v2748_v38 = vpop.f32.mrb[28].mxu0 }
 0x15b   :  { %v4386_v39 = vadd.f32 %v2827_v37, %v2747_v35  ;;  %v2828_v41 = vpop.f32.mrb[28].mxu1  ;;  %v2749_v7 = vpop.f32.mrb[29].mxu0 }
 0x15c   :  { %v2750_v42 = vadd.f32 %v2749_v7, %v2748_v38  ;;  %v2829_v44 = vpop.f32.mrb[29].mxu1 }
 0x15d   :  { %v2830_v13 = vadd.f32 %v2829_v44, %v2828_v41 }
 0x15f   :  { %v4388_v34 = vadd.f32 %v2830_v13, %v2750_v42  ;;  %v2751_v49 = vpop.f32.mrb[30].mxu0 }
 0x160   :  { %v2831_v50 = vpop.f32.mrb[30].mxu1  ;;  %v2752_v51 = vpop.f32.mrb[31].mxu0 }
 0x161   :  { %v2753_v22 = vadd.f32 %v2752_v51, %v2751_v49  ;;  %v2832_v24 = vpop.f32.mrb[31].mxu1 }
 0x162   :  { %v2833_v31 = vadd.f32 %v2832_v24, %v2831_v50 }
 0x164   :  { %v4390_v55 = vadd.f32 %v2833_v31, %v2753_v22  ;;  %v2866_v11 = vpop.f32.mrb[32].mxu0 }
 0x165   :  { %v2867_v14 = vpop.f32.mrb[33].mxu0  ;;  %v2946_v43 = vpop.f32.mrb[32].mxu1 }
 0x166   :  { %v2868_v48 = vadd.f32 %v2867_v14, %v2866_v11  ;;  %v2947_v16 = vpop.f32.mrb[33].mxu1 }
 0x167   :  { %v2948_v46 = vadd.f32 %v2947_v16, %v2946_v43 }
 0x168   :  { %v1838_v15 = vadd.f32 %v2868_v48, %v4349_v45  ;;  %v2869_v17 = vpop.f32.mrb[34].mxu0 }
 0x169   :  { %v2870_v52 = vpop.f32.mrb[35].mxu0  ;;  %v2949_v62 = vpop.f32.mrb[34].mxu1 }
 0x16a   :  { %v1983_v56 = vadd.f32 %v2948_v46, %v1838_v15  ;;  %v2871_v58 = vadd.f32 %v2870_v52, %v2869_v17  ;;  %v2950_v59 = vpop.f32.mrb[35].mxu1 }
 0x16b   :  { %v2951_v26 = vadd.f32 %v2950_v59, %v2949_v62 }
 0x16c   :  { %v1843_v60 = vadd.f32 %v2871_v58, %v4351_v57  ;;  %v2872_v61 = vpop.f32.mrb[36].mxu0 }
 0x16d   :  { %v2873_v1 = vpop.f32.mrb[37].mxu0  ;;  %v2952_v2 = vpop.f32.mrb[36].mxu1 }
 0x16e   :  { %v1988_v4 = vadd.f32 %v2951_v26, %v1843_v60  ;;  %v2874_v5 = vadd.f32 %v2873_v1, %v2872_v61  ;;  %v2953_v6 = vpop.f32.mrb[37].mxu1 }
 0x16f   :  { %v2954_v9 = vadd.f32 %v2953_v6, %v2952_v2 }
 0x170   :  { %v3244_v18 = vpack.c.bf16 %v1988_v4, %v1983_v56  ;;  %v1848_v20 = vadd.f32 %v2874_v5, %v4353_v63  ;;  %v2875_v21 = vpop.f32.mrb[38].mxu0 }
 0x171   :  { %v2876_v25 = vpop.f32.mrb[39].mxu0  ;;  %v2955_v27 = vpop.f32.mrb[38].mxu1 }
 0x172   :  { %v1993_v57 = vadd.f32 %v2954_v9, %v1848_v20  ;;  %v2877_v28 = vadd.f32 %v2876_v25, %v2875_v21  ;;  %v2956_v3 = vpop.f32.mrb[39].mxu1  ;;  %3246 = vmatprep.subr.msk.bf16.mxu0 %vm4396_vm5, %v3244_v18  ;;  %3292 = vmatprep.subr.msk.bf16.mxu1 %vm4396_vm5, %v3244_v18 }
 0x173   :  { %v2957_v23 = vadd.f32 %v2956_v3, %v2955_v27  ;;  %3249 = vmatpush3.bf16.xpose.msk.msra.mxu0 %vm4396_vm5, %v3244_v18  ;;  %3300 = vmatpush3.bf16.xpose.msk.msra.mxu1 %vm4396_vm5, %v3244_v18 }
 0x174   :  { %v1853_v63 = vadd.f32 %v2877_v28, %v4356_v10  ;;  %v2878_v32 = vpop.f32.mrb[40].mxu0 }
 0x175   :  { %v2879_v35 = vpop.f32.mrb[41].mxu0  ;;  %v2958_v36 = vpop.f32.mrb[40].mxu1 }
 0x176   :  { %v1998_v37 = vadd.f32 %v2957_v23, %v1853_v63  ;;  %v2880_v38 = vadd.f32 %v2879_v35, %v2878_v32  ;;  %v2959_v41 = vpop.f32.mrb[41].mxu1 }
 0x177   :  { %v2960_v7 = vadd.f32 %v2959_v41, %v2958_v36 }
 0x178   :  { %v3250_v42 = vpack.c.bf16 %v1998_v37, %v1993_v57  ;;  %v1858_v44 = vadd.f32 %v2880_v38, %v4366_v8  ;;  %v2881_v13 = vpop.f32.mrb[42].mxu0 }
 0x179   :  { %v2882_v49 = vpop.f32.mrb[43].mxu0  ;;  %v2961_v50 = vpop.f32.mrb[42].mxu1 }
 0x17a   :  { %v2003_v51 = vadd.f32 %v2960_v7, %v1858_v44  ;;  %v2883_v22 = vadd.f32 %v2882_v49, %v2881_v13  ;;  %v2962_v24 = vpop.f32.mrb[43].mxu1  ;;  %3252 = vmatprep.subr.msk.bf16.mxu0 %vm4396_vm5, %v3250_v42  ;;  %3293 = vmatprep.subr.msk.bf16.mxu1 %vm4396_vm5, %v3250_v42 }
 0x17b   :  { %v2963_v10 = vadd.f32 %v2962_v24, %v2961_v50  ;;  %3255 = vmatpush3.bf16.xpose.msk.msra.mxu0 %vm4396_vm5, %v3250_v42  ;;  %3301 = vmatpush3.bf16.xpose.msk.msra.mxu1 %vm4396_vm5, %v3250_v42 }
 0x17c   :  { %v1863_v8 = vadd.f32 %v2883_v22, %v4370_v40  ;;  %v2884_v31 = vpop.f32.mrb[44].mxu0 }
 0x17d   :  { %v2885_v11 = vpop.f32.mrb[45].mxu0  ;;  %v2964_v14 = vpop.f32.mrb[44].mxu1 }
 0x17e   :  { %v2008_v43 = vadd.f32 %v2963_v10, %v1863_v8  ;;  %v2886_v48 = vadd.f32 %v2885_v11, %v2884_v31  ;;  %v2965_v16 = vpop.f32.mrb[45].mxu1 }
 0x17f   :  { %v2966_v46 = vadd.f32 %v2965_v16, %v2964_v14 }
 0x180   :  { %v3256_v15 = vpack.c.bf16 %v2008_v43, %v2003_v51  ;;  %v1868_v17 = vadd.f32 %v2886_v48, %v4372_v47  ;;  %v2887_v52 = vpop.f32.mrb[46].mxu0 }
 0x181   :  { %v2888_v62 = vpop.f32.mrb[47].mxu0  ;;  %v2967_v56 = vpop.f32.mrb[46].mxu1 }
 0x182   :  { %v2013_v58 = vadd.f32 %v2966_v46, %v1868_v17  ;;  %v2889_v59 = vadd.f32 %v2888_v62, %v2887_v52  ;;  %v2968_v26 = vpop.f32.mrb[47].mxu1  ;;  %3258 = vmatprep.subr.msk.bf16.mxu0 %vm4396_vm5, %v3256_v15  ;;  %3294 = vmatprep.subr.msk.bf16.mxu1 %vm4396_vm5, %v3256_v15 }
 0x183   :  { %v2969_v40 = vadd.f32 %v2968_v26, %v2967_v56  ;;  %3261 = vmatpush3.bf16.xpose.msk.msra.mxu0 %vm4396_vm5, %v3256_v15  ;;  %3302 = vmatpush3.bf16.xpose.msk.msra.mxu1 %vm4396_vm5, %v3256_v15 }
 0x184   :  { %v1873_v47 = vadd.f32 %v2889_v59, %v4374_v54  ;;  %v2890_v60 = vpop.f32.mrb[48].mxu0 }
 0x185   :  { %v2891_v61 = vpop.f32.mrb[49].mxu0  ;;  %v2970_v1 = vpop.f32.mrb[48].mxu1 }
 0x186   :  { %v2018_v2 = vadd.f32 %v2969_v40, %v1873_v47  ;;  %v2892_v4 = vadd.f32 %v2891_v61, %v2890_v60  ;;  %v2971_v5 = vpop.f32.mrb[49].mxu1 }
 0x187   :  { %v2972_v6 = vadd.f32 %v2971_v5, %v2970_v1 }
 0x188   :  { %v3262_v9 = vpack.c.bf16 %v2018_v2, %v2013_v58  ;;  %v1878_v18 = vadd.f32 %v2892_v4, %v4376_v12  ;;  %v2893_v20 = vpop.f32.mrb[50].mxu0 }
 0x189   :  { %v2894_v21 = vpop.f32.mrb[51].mxu0  ;;  %v2973_v25 = vpop.f32.mrb[50].mxu1 }
 0x18a   :  { %v2023_v27 = vadd.f32 %v2972_v6, %v1878_v18  ;;  %v2895_v57 = vadd.f32 %v2894_v21, %v2893_v20  ;;  %v2974_v28 = vpop.f32.mrb[51].mxu1  ;;  %3264 = vmatprep.subr.msk.bf16.mxu0 %vm4396_vm5, %v3262_v9  ;;  %3295 = vmatprep.subr.msk.bf16.mxu1 %vm4396_vm5, %v3262_v9  ;;  %v2224_v21 = vld [vmem:[#allocation5 + $0x18] sm:$0xff] }
 0x18b   :  { %v2975_v54 = vadd.f32 %v2974_v28, %v2973_v25  ;;  %3267 = vmatpush3.bf16.xpose.msk.msra.mxu0 %vm4396_vm5, %v3262_v9  ;;  %3303 = vmatpush3.bf16.xpose.msk.msra.mxu1 %vm4396_vm5, %v3262_v9  ;;  %v2221_v25 = vld [vmem:[#allocation5] sm:$0xff] }
 0x18c   :  { %v1883_v12 = vadd.f32 %v2895_v57, %v4378_v53  ;;  %v2896_v3 = vpop.f32.mrb[52].mxu0 }
 0x18d   :  { %v2897_v23 = vpop.f32.mrb[53].mxu0  ;;  %v2976_v63 = vpop.f32.mrb[52].mxu1 }
 0x18e   :  { %v2028_v32 = vadd.f32 %v2975_v54, %v1883_v12  ;;  %v2898_v35 = vadd.f32 %v2897_v23, %v2896_v3  ;;  %v2977_v36 = vpop.f32.mrb[53].mxu1 }
 0x18f   :  { %v2978_v37 = vadd.f32 %v2977_v36, %v2976_v63 }
 0x190   :  { %v3268_v38 = vpack.c.bf16 %v2028_v32, %v2023_v27  ;;  %v1888_v41 = vadd.f32 %v2898_v35, %v4380_v0  ;;  %v2899_v7 = vpop.f32.mrb[54].mxu0  ;;  %v2223_v27 = vld [vmem:[#allocation5 + $0x10] sm:$0xff] }
 0x191   :  { %v2900_v42 = vpop.f32.mrb[55].mxu0  ;;  %v2979_v44 = vpop.f32.mrb[54].mxu1 }
 0x192   :  { %v2033_v13 = vadd.f32 %v2978_v37, %v1888_v41  ;;  %v2901_v49 = vadd.f32 %v2900_v42, %v2899_v7  ;;  %v2980_v50 = vpop.f32.mrb[55].mxu1  ;;  %3270 = vmatprep.subr.msk.bf16.mxu0 %vm4396_vm5, %v3268_v38  ;;  %3296 = vmatprep.subr.msk.bf16.mxu1 %vm4396_vm5, %v3268_v38 }
 0x193   :  { %v2981_v53 = vadd.f32 %v2980_v50, %v2979_v44  ;;  %3273 = vmatpush3.bf16.xpose.msk.msra.mxu0 %vm4396_vm5, %v3268_v38  ;;  %3304 = vmatpush3.bf16.xpose.msk.msra.mxu1 %vm4396_vm5, %v3268_v38 }
 0x194   :  { %v1893_v0 = vadd.f32 %v2901_v49, %v4382_v19  ;;  %v2902_v51 = vpop.f32.mrb[56].mxu0 }
 0x195   :  { %v2903_v22 = vpop.f32.mrb[57].mxu0  ;;  %v2982_v24 = vpop.f32.mrb[56].mxu1 }
 0x196   :  { %v2038_v10 = vadd.f32 %v2981_v53, %v1893_v0  ;;  %v2904_v8 = vadd.f32 %v2903_v22, %v2902_v51  ;;  %v2983_v31 = vpop.f32.mrb[57].mxu1 }
 0x197   :  { %v2984_v11 = vadd.f32 %v2983_v31, %v2982_v24 }
 0x198   :  { %v3274_v14 = vpack.c.bf16 %v2038_v10, %v2033_v13  ;;  %v1898_v43 = vadd.f32 %v2904_v8, %v4384_v30  ;;  %v2905_v48 = vpop.f32.mrb[58].mxu0 }
 0x199   :  { %v2906_v16 = vpop.f32.mrb[59].mxu0  ;;  %v2985_v46 = vpop.f32.mrb[58].mxu1 }
 0x19a   :  { %v2043_v15 = vadd.f32 %v2984_v11, %v1898_v43  ;;  %v2907_v17 = vadd.f32 %v2906_v16, %v2905_v48  ;;  %v2986_v52 = vpop.f32.mrb[59].mxu1  ;;  %3276 = vmatprep.subr.msk.bf16.mxu0 %vm4396_vm5, %v3274_v14  ;;  %3297 = vmatprep.subr.msk.bf16.mxu1 %vm4396_vm5, %v3274_v14 }
 0x19b   :  { %v2987_v19 = vadd.f32 %v2986_v52, %v2985_v46  ;;  %3279 = vmatpush3.bf16.xpose.msk.msra.mxu0 %vm4396_vm5, %v3274_v14  ;;  %3305 = vmatpush3.bf16.xpose.msk.msra.mxu1 %vm4396_vm5, %v3274_v14 }
 0x19c   :  { %v1903_v30 = vadd.f32 %v2907_v17, %v4386_v39  ;;  %v2908_v62 = vpop.f32.mrb[60].mxu0 }
 0x19d   :  { %v2909_v56 = vpop.f32.mrb[61].mxu0  ;;  %v2988_v58 = vpop.f32.mrb[60].mxu1 }
 0x19e   :  { %v2048_v59 = vadd.f32 %v2987_v19, %v1903_v30  ;;  %v2910_v26 = vadd.f32 %v2909_v56, %v2908_v62  ;;  %v2989_v40 = vpop.f32.mrb[61].mxu1 }
 0x19f   :  { %v2990_v47 = vadd.f32 %v2989_v40, %v2988_v58 }
 0x1a0   :  { %v3280_v60 = vpack.c.bf16 %v2048_v59, %v2043_v15  ;;  %v1908_v61 = vadd.f32 %v2910_v26, %v4388_v34  ;;  %v2911_v1 = vpop.f32.mrb[62].mxu0 }
 0x1a1   :  { %v2912_v2 = vpop.f32.mrb[63].mxu0  ;;  %v2991_v4 = vpop.f32.mrb[62].mxu1 }
 0x1a2   :  { %v2053_v5 = vadd.f32 %v2990_v47, %v1908_v61  ;;  %v2913_v6 = vadd.f32 %v2912_v2, %v2911_v1  ;;  %v2992_v9 = vpop.f32.mrb[63].mxu1  ;;  %3282 = vmatprep.subr.msk.bf16.mxu0 %vm4396_vm5, %v3280_v60  ;;  %3298 = vmatprep.subr.msk.bf16.mxu1 %vm4396_vm5, %v3280_v60 }
 0x1a3   :  { %v2993_v39 = vadd.f32 %v2992_v9, %v2991_v4  ;;  %3285 = vmatpush3.bf16.xpose.msk.msra.mxu0 %vm4396_vm5, %v3280_v60  ;;  %3306 = vmatpush3.bf16.xpose.msk.msra.mxu1 %vm4396_vm5, %v3280_v60 }
 0x1a4   :  { %v1913_v34 = vadd.f32 %v2913_v6, %v4390_v55  ;;  %v2222_v55 = vld [vmem:[#allocation5 + $0x8] sm:$0xff] }
 0x1a6   :  { %v2058_v18 = vadd.f32 %v2993_v39, %v1913_v34 }
 0x1a8   :  { %v3286_v20 = vpack.c.bf16 %v2058_v18, %v2053_v5 }
 0x1aa   :  { %3288 = vmatprep.subr.msk.bf16.mxu0 %vm4396_vm5, %v3286_v20  ;;  %3299 = vmatprep.subr.msk.bf16.mxu1 %vm4396_vm5, %v3286_v20 }
 0x1ab   :  { %3291 = vmatpush3.bf16.xpose.msk.msra.mxu0 %vm4396_vm5, %v3286_v20  ;;  %3307 = vmatpush3.bf16.xpose.msk.msra.mxu1 %vm4396_vm5, %v3286_v20 }
 0x1b2   :  { %3047 = vmatmul.mubr.msk.f32.vlgmr.msra.gmra.mrb[64].mxu0 %vm2075_vm3, %v4361_v29  ;;  %3050 = vmatmul.mubr.msk.f32.vlgmr.msra.gmra.mrb[64].mxu1 %vm2075_vm3, %v4368_v33 }
 0x285   :  { %v3048_v57 = vpop.f32.mrb[64].mxu0  ;;  %v3051_v28 = vpop.f32.mrb[64].mxu1 }
 0x286   :  { %v2226_v54 = vadd.f32 %v3048_v57, %v2222_v55  ;;  %v2228_v12 = vadd.f32 %v3051_v28, %v2224_v21  ;;  %v2202_v3 = vpop.f32.mrb[65].mxu0  ;;  %v2212_v23 = vpop.f32.mrb[65].mxu1 }
 0x287   :  { %v2225_v63 = vadd.f32 %v2221_v25, %v2202_v3  ;;  %v2227_v32 = vadd.f32 %v2223_v27, %v2212_v23 }
 0x288   :  { %2230 = vst [vmem:[#allocation5 + $0x8] sm:$0xff] %v2226_v54  ;;  %2232 = vst [vmem:[#allocation5 + $0x18] sm:$0xff] %v2228_v12 }
 0x289   :  { %2229 = vst [vmem:[#allocation5] sm:$0xff] %v2225_v63  ;;  %2231 = vst [vmem:[#allocation5 + $0x10] sm:$0xff] %v2227_v32 }
 0x28a PF:  { %s3341_s2 = smov [#allocation5]  }
 0x28b   :  { %s2238_s8 = sshll.u32 %s3341_s2, 4  ;;  %s2239_s8 = int_to_ptr.vmem [resolvable:$true] %s2238_s8 }
 0x28c   :  { %s3314_s9 = scalar_lea.vmem %s2239_s8, 512  ;;  %p3319_p6 = scmp.lt.s32.totalorder %s2239_s8, %s2239_s8 }
 0x28d   :  { %p3315_p5 = scmp.ne.s32.totalorder %s2239_s8, %s3314_s9  ;;  %p3320_p7 = scmp.lt.s32.totalorder %s3314_s9, %s3314_s9 }
 0x28f   :  { %p3321_p8 = por %p3320_p7, %p3319_p6 }
 0x291   :  { %p3322_p9 = pnand %p3321_p8, %p3315_p5 }
 0x293   :  { %3325 = shalt.err (!%p3322_p9)
}
 0x294   :  { %s3326_s12 = scalar_lea.hbm %s4498_s4, 512 }
 0x295   :  { %p3327_p10 = scmp.ne.s32.totalorder %s4498_s4, %s3326_s12  ;;  %p3330_p11 = scmp.lt.u32.totalorder %s3326_s12, %s4498_s4 }
 0x297   :  { %p3332_p12 = pnand %p3330_p11, %p3327_p10 }
 0x299   :  { %3335 = shalt.err (!%p3332_p12)
}
 0x29a   :  { %s3342_s17 = smov 128   ;;  %s3343_s18 = smov 8  }
 0x29b   :  { %2244 = dma.vmem_to_hbm [thread:$0]  %s2239_s8, 512, %s4498_s4, [#allocation6], %s3342_s17, %s3342_s17, %s3343_s18  }
 0x29c   :  { %3336 = dma.done.wait [#allocation6], 512  }
 0x29d   :  { %3337 = vsyncadd [#allocation6], 4294966784 }
 0x29e   :  { %2248 = vsyncpa [#allocation6], 1 }

</bundles_post_ra>
